<compile_context>
chip_gen: v7x
topology: tpu7x:2x2x1
jax: 0.10.0
libtpu: 0.0.40
codegen_flags: <defaults>
</compile_context>

<pallas_src>
import math
import functools

import jax
import jax.numpy as jnp
from jax.experimental import pallas as pl
from jax.experimental.pallas import tpu as pltpu


# --------------------------- VMEM budget (per-chip) ----------------------------

def _vmem_limit_bytes():
    """Scoped-VMEM limit with headroom below physical capacity.
    v7x: 64 MiB physical -> ~52 MiB; v5e/v6e: 128 MiB -> capped at 100 MiB."""
    try:
        cap = int(pltpu.get_tpu_info().vmem_capacity_bytes)
    except Exception:
        cap = 64 * 1024 * 1024
    return int(min(cap - 12 * 1024 * 1024, 100 * 1024 * 1024))


_VMEM_LIMIT = _vmem_limit_bytes()
# Budget used when choosing tile sizes (extra room for semaphores / compiler
# internal scratch below the scoped-VMEM limit).
_TILE_BUDGET = _VMEM_LIMIT - 8 * 1024 * 1024


def _cparams(sem):
    return pltpu.CompilerParams(dimension_semantics=sem,
                                vmem_limit_bytes=_VMEM_LIMIT)


# ------------------------------- tiling helpers --------------------------------

def _pick_tile(dim, target, align):
    """Largest divisor of `dim` that is <= target and a multiple of `align`;
    falls back to the full dim (always legal: block == full array dim)."""
    if dim <= target:
        return dim
    t = (target // align) * align
    while t >= align:
        if dim % t == 0:
            return t
        t -= align
    return dim


def _shrink_tile(dim, cur, align):
    """Largest divisor of `dim` that is a multiple of `align` and strictly
    smaller than `cur`; returns `cur` if none exists."""
    t = ((cur - 1) // align) * align
    while t >= align:
        if dim % t == 0:
            return t
        t -= align
    return cur


def _gelu(x):
    # tanh-form GELU: the transcendental lands on the EUP slot instead of a
    # ~12-op VALU erf polynomial (deviation vs exact erf ~1e-3 abs).
    c = math.sqrt(2.0 / math.pi)
    return 0.5 * x * (1.0 + jnp.tanh(c * (x + 0.044715 * x * x * x)))


# ----------------------------- tiled linear (GEMM) -----------------------------

def _linear_kernel(x_ref, w_ref, b_ref, o_ref, acc_ref, *, act, nk):
    k = pl.program_id(2)

    @pl.when(k == 0)
    def _():
        acc_ref[...] = jnp.zeros_like(acc_ref)

    acc_ref[...] += jnp.dot(x_ref[...], w_ref[...],
                            preferred_element_type=jnp.float32)

    @pl.when(k == nk - 1)
    def _():
        y = acc_ref[...] + b_ref[...].astype(jnp.float32)
        if act == "gelu":
            y = _gelu(y)
        o_ref[...] = y.astype(o_ref.dtype)


def linear(x, w, b, act="none"):
    """x:(M,K) @ w:(K,N) + b:(N,), bf16 inputs + f32 accumulator, tiled over a
    (M/tm, N/tn, K/tk) grid.  Prefers full-N / full-K blocks (fewer grid steps,
    weights streamed once per row-tile), shrinking with 256-aligned divisors
    only if the VMEM budget demands it."""
    M, K = x.shape
    N = w.shape[1]
    be = x.dtype.itemsize
    sub = 16 if be == 2 else 8
    tm = _pick_tile(M, 512, sub)
    n_align = 256 if N % 256 == 0 else 128
    k_align = 256 if K % 256 == 0 else 128
    tn, tk = N, K

    def est(tn_, tk_):
        return 2 * (tm * tk_ + tk_ * tn_ + tm * tn_) * be + tm * tn_ * 4

    while est(tn, tk) > _TILE_BUDGET:
        new_tn = _shrink_tile(N, tn, n_align)
        if new_tn < tn:
            tn = new_tn
            continue
        new_tk = _shrink_tile(K, tk, k_align)
        if new_tk < tk:
            tk = new_tk
            continue
        break

    nk = K // tk
    grid = (M // tm, N // tn, nk)
    return pl.pallas_call(
        functools.partial(_linear_kernel, act=act, nk=nk),
        out_shape=jax.ShapeDtypeStruct((M, N), x.dtype),
        grid=grid,
        in_specs=[
            pl.BlockSpec((tm, tk), lambda i, j, k: (i, k)),
            pl.BlockSpec((tk, tn), lambda i, j, k: (k, j)),
            pl.BlockSpec((1, tn), lambda i, j, k: (0, j)),
        ],
        out_specs=pl.BlockSpec((tm, tn), lambda i, j, k: (i, j)),
        scratch_shapes=[pltpu.VMEM((tm, tn), jnp.float32)],
        compiler_params=_cparams(("parallel", "parallel", "arbitrary")),
    )(x, w, b.reshape(1, N))


# -------------------- GEMM + bias + residual + LayerNorm fused -----------------

def _linear_add_ln_kernel(x_ref, w_ref, b_ref, r_ref, g_ref, bb_ref,
                          o_ref, acc_ref, *, nk, eps):
    k = pl.program_id(1)

    @pl.when(k == 0)
    def _():
        acc_ref[...] = jnp.zeros_like(acc_ref)

    acc_ref[...] += jnp.dot(x_ref[...], w_ref[...],
                            preferred_element_type=jnp.float32)

    @pl.when(k == nk - 1)
    def _():
        y = (acc_ref[...] + b_ref[...].astype(jnp.float32)
             + r_ref[...].astype(jnp.float32))
        u = jnp.mean(y, axis=-1, keepdims=True)
        yc = y - u
        s = jnp.mean(yc * yc, axis=-1, keepdims=True)
        yn = yc * jax.lax.rsqrt(s + eps)
        o_ref[...] = (g_ref[...].astype(jnp.float32) * yn
                      + bb_ref[...].astype(jnp.float32)).astype(o_ref.dtype)


def linear_add_ln(x, w, b, res, gamma, beta, eps=1e-12):
    """LayerNorm(x @ w + b + res); the output block spans the full hidden dim
    (tn = N) so LN statistics are computed in the GEMM flush — no extra HBM
    round trip or kernel launch for the residual add / LayerNorm."""
    M, K = x.shape
    N = w.shape[1]
    be = x.dtype.itemsize
    sub = 16 if be == 2 else 8
    tm = _pick_tile(M, 512, sub)
    k_align = 256 if K % 256 == 0 else 128
    tk = K

    def est(tm_, tk_):
        return 2 * (tm_ * tk_ + tk_ * N + 2 * tm_ * N) * be + tm_ * N * 4

    while est(tm, tk) > _TILE_BUDGET:
        new_tk = _shrink_tile(K, tk, k_align)
        if new_tk < tk:
            tk = new_tk
            continue
        new_tm = _shrink_tile(M, tm, sub)
        if new_tm < tm:
            tm = new_tm
            continue
        break

    nk = K // tk
    grid = (M // tm, nk)
    return pl.pallas_call(
        functools.partial(_linear_add_ln_kernel, nk=nk, eps=eps),
        out_shape=jax.ShapeDtypeStruct((M, N), x.dtype),
        grid=grid,
        in_specs=[
            pl.BlockSpec((tm, tk), lambda i, k: (i, k)),   # x
            pl.BlockSpec((tk, N), lambda i, k: (k, 0)),    # w
            pl.BlockSpec((1, N), lambda i, k: (0, 0)),     # bias
            pl.BlockSpec((tm, N), lambda i, k: (i, 0)),    # residual
            pl.BlockSpec((1, N), lambda i, k: (0, 0)),     # gamma
            pl.BlockSpec((1, N), lambda i, k: (0, 0)),     # beta
        ],
        out_specs=pl.BlockSpec((tm, N), lambda i, k: (i, 0)),
        scratch_shapes=[pltpu.VMEM((tm, N), jnp.float32)],
        compiler_params=_cparams(("parallel", "arbitrary")),
    )(x, w, b.reshape(1, N), res, gamma.reshape(1, N), beta.reshape(1, N))


# ---------------- fused MLP: GEMM1 + GELU + GEMM2 + residual + LN --------------

def _mlp_kernel(x_ref, w1_ref, b1_ref, w2_ref, b2_ref, r_ref, g_ref, bb_ref,
                o_ref, acc_ref, *, nc, eps):
    c = pl.program_id(1)

    @pl.when(c == 0)
    def _():
        acc_ref[...] = jnp.zeros_like(acc_ref)

    # (tm, ti) GELU intermediate lives only in VMEM/vregs — never hits HBM.
    inter = jnp.dot(x_ref[...], w1_ref[...], preferred_element_type=jnp.float32)
    inter = _gelu(inter + b1_ref[...].astype(jnp.float32))
    acc_ref[...] += jnp.dot(inter.astype(w2_ref.dtype), w2_ref[...],
                            preferred_element_type=jnp.float32)

    @pl.when(c == nc - 1)
    def _():
        y = (acc_ref[...] + b2_ref[...].astype(jnp.float32)
             + r_ref[...].astype(jnp.float32))
        u = jnp.mean(y, axis=-1, keepdims=True)
        yc = y - u
        s = jnp.mean(yc * yc, axis=-1, keepdims=True)
        yn = yc * jax.lax.rsqrt(s + eps)
        o_ref[...] = (g_ref[...].astype(jnp.float32) * yn
                      + bb_ref[...].astype(jnp.float32)).astype(o_ref.dtype)


def mlp_fused(x, w1, b1, w2, b2, res, gamma, beta, eps=1e-12):
    """LayerNorm(gelu(x @ w1 + b1) @ w2 + b2 + res), tiled over (M/tm, I/ti)
    with the intermediate-dim chunks as the reduction axis."""
    M, H = x.shape
    I = w1.shape[1]
    be = x.dtype.itemsize
    sub = 16 if be == 2 else 8
    tm = _pick_tile(M, 512, sub)
    i_align = 256 if I % 256 == 0 else 128
    ti = _pick_tile(I, 1024, i_align)

    def est(tm_, ti_):
        return (2 * (tm_ * H + H * ti_ + ti_ * H + 2 * tm_ * H) * be
                + tm_ * H * 4 + tm_ * ti_ * 4)

    while est(tm, ti) > _TILE_BUDGET:
        new_ti = _shrink_tile(I, ti, i_align)
        if new_ti < ti:
            ti = new_ti
            continue
        new_tm = _shrink_tile(M, tm, sub)
        if new_tm < tm:
            tm = new_tm
            continue
        break

    nc = I // ti
    grid = (M // tm, nc)
    return pl.pallas_call(
        functools.partial(_mlp_kernel, nc=nc, eps=eps),
        out_shape=jax.ShapeDtypeStruct((M, H), x.dtype),
        grid=grid,
        in_specs=[
            pl.BlockSpec((tm, H), lambda i, c: (i, 0)),    # x (resident over c)
            pl.BlockSpec((H, ti), lambda i, c: (0, c)),    # w1 chunk
            pl.BlockSpec((1, ti), lambda i, c: (0, c)),    # b1 chunk
            pl.BlockSpec((ti, H), lambda i, c: (c, 0)),    # w2 chunk
            pl.BlockSpec((1, H), lambda i, c: (0, 0)),     # b2
            pl.BlockSpec((tm, H), lambda i, c: (i, 0)),    # residual
            pl.BlockSpec((1, H), lambda i, c: (0, 0)),     # gamma
            pl.BlockSpec((1, H), lambda i, c: (0, 0)),     # beta
        ],
        out_specs=pl.BlockSpec((tm, H), lambda i, c: (i, 0)),
        scratch_shapes=[pltpu.VMEM((tm, H), jnp.float32)],
        compiler_params=_cparams(("parallel", "arbitrary")),
    )(x, w1, b1.reshape(1, I), w2, b2.reshape(1, H), res,
      gamma.reshape(1, H), beta.reshape(1, H))


# ---------------------------------- attention -----------------------------------

def _attn_kernel(q_ref, k_ref, v_ref, m_ref, o_ref, *,
                 scale, heads_per_block, head_dim):
    m = m_ref[0].astype(jnp.float32)                        # (1, S) additive mask
    ctxs = []
    for h in range(heads_per_block):                        # static unroll
        sl = slice(h * head_dim, (h + 1) * head_dim)
        q = q_ref[0, :, sl]                                 # (S, Dh), bf16
        k = k_ref[0, :, sl]
        v = v_ref[0, :, sl]
        # scores = q @ k^T * scale + mask (contract over head_dim, no transpose)
        s = jax.lax.dot_general(q, k, (((1,), (1,)), ((), ())),
                                preferred_element_type=jnp.float32) * scale + m
        s = s - jnp.max(s, axis=-1, keepdims=True)
        p = jnp.exp(s)
        p = p * pl.reciprocal(jnp.sum(p, axis=-1, keepdims=True), approx=True)
        ctxs.append(jnp.dot(p.astype(v.dtype), v,
                            preferred_element_type=jnp.float32))
    # One lane-dense (S, g*Dh) store instead of g masked 64-lane column stores.
    o_ref[0] = jnp.concatenate(ctxs, axis=-1).astype(o_ref.dtype)


def _heads_per_block(num_heads, head_dim):
    # Smallest head-group size g dividing num_heads with g*head_dim a multiple
    # of 128 (lane-dense blocks / unmasked stores); fall back to all heads.
    for g in range(1, num_heads + 1):
        if num_heads % g == 0 and (g * head_dim) % 128 == 0:
            return g
    return num_heads


def attention(qkv, ext_mask, num_heads, head_dim):
    """qkv:(B,S,3H) fused Q/K/V activations (bf16); ext_mask:(B,1,S) additive.
    Head slices are read straight out of the QKV slab via BlockSpec index maps
    (no split_heads / merge transposes).  Returns context (B,S,H)."""
    B, S, _ = qkv.shape
    H = num_heads * head_dim
    g = _heads_per_block(num_heads, head_dim)
    gd = g * head_dim
    ngroups = num_heads // g

    qkv_block = (1, S, gd)
    return pl.pallas_call(
        functools.partial(_attn_kernel, scale=1.0 / math.sqrt(head_dim),
                          heads_per_block=g, head_dim=head_dim),
        out_shape=jax.ShapeDtypeStruct((B, S, H), qkv.dtype),
        grid=(B, ngroups),
        in_specs=[
            pl.BlockSpec(qkv_block, lambda b, gi: (b, 0, gi)),                # Q
            pl.BlockSpec(qkv_block, lambda b, gi: (b, 0, ngroups + gi)),      # K
            pl.BlockSpec(qkv_block, lambda b, gi: (b, 0, 2 * ngroups + gi)),  # V
            pl.BlockSpec((1, 1, S), lambda b, gi: (b, 0, 0)),                 # mask
        ],
        out_specs=pl.BlockSpec((1, S, gd), lambda b, gi: (b, 0, gi)),
        compiler_params=_cparams(("parallel", "parallel")),
    )(qkv, qkv, qkv, ext_mask)


# ------------------------------- model (glue) -----------------------------------

def init_params(key, cfg):
    H = cfg["hidden_size"]
    I = cfg["intermediate_size"]
    std = cfg["initializer_range"]
    n_layers = cfg["num_hidden_layers"]

    def nrm(k, shape):
        # Weights stored in bf16 (matmul-path dtype); biases / LN params in f32.
        return (std * jax.random.normal(k, shape)).astype(jnp.bfloat16)

    layers = []
    for lk in jax.random.split(key, n_layers):
        k = jax.random.split(lk, 4)
        layers.append({
            # Q/K/V projections fused into one (H, 3H) weight / (3H,) bias.
            "qkv_w": nrm(k[0], (H, 3 * H)),
            "qkv_b": jnp.zeros((3 * H,), jnp.float32),
            "ao_w": nrm(k[1], (H, H)), "ao_b": jnp.zeros((H,), jnp.float32),
            "ao_ln_g": jnp.ones((H,), jnp.float32),
            "ao_ln_b": jnp.zeros((H,), jnp.float32),
            "i_w": nrm(k[2], (H, I)), "i_b": jnp.zeros((I,), jnp.float32),
            "o_w": nrm(k[3], (I, H)), "o_b": jnp.zeros((H,), jnp.float32),
            "o_ln_g": jnp.ones((H,), jnp.float32),
            "o_ln_b": jnp.zeros((H,), jnp.float32),
        })
    return {"layers": layers}


def bert_layer(p, x2d, ext_mask, B, S, nH, Dh):
    H = nH * Dh
    # ---- self-attention (fused QKV projection: x read from HBM once) ----
    qkv = linear(x2d, p["qkv_w"], p["qkv_b"])                       # (B*S, 3H)
    ctx = attention(qkv.reshape(B, S, 3 * H), ext_mask, nH, Dh)     # (B, S, H)
    ctx2d = ctx.reshape(B * S, H)

    # ---- BertSelfOutput: dense -> (dropout=identity) -> LN(x + residual),
    #      all inside one GEMM kernel (LN fused into the k-flush) ----
    attn_out = linear_add_ln(ctx2d, p["ao_w"], p["ao_b"], x2d,
                             p["ao_ln_g"], p["ao_ln_b"])

    # ---- BertIntermediate + BertOutput fused: GEMM1 + GELU + GEMM2 +
    #      residual + LN; the (tm, ti) intermediate never hits HBM ----
    out = mlp_fused(attn_out, p["i_w"], p["i_b"], p["o_w"], p["o_b"],
                    attn_out, p["o_ln_g"], p["o_ln_b"])
    return out


def bert_encoder_forward(params, cfg, hidden_states, attention_mask,
                         output_all_encoded_layers=True):
    """Matches BertEncoder.forward(hidden_states, attention_mask, ...)."""
    B, S, H = hidden_states.shape
    nH = cfg["num_attention_heads"]
    Dh = H // nH

    # Additive extended mask: 0 for keep, -10000 for masked, shape (B, 1, S).
    ext_mask = (1.0 - attention_mask.astype(jnp.float32))[:, None, :] * -10000.0

    # Activation slab travels between kernels in bf16 (matmul inputs / HBM
    # bytes halved); LN stats, softmax and accumulators stay in f32 in-kernel.
    x = hidden_states.astype(jnp.bfloat16).reshape(B * S, H)
    all_layers = []
    for lp in params["layers"]:
        x = bert_layer(lp, x, ext_mask, B, S, nH, Dh)
        if output_all_encoded_layers:
            all_layers.append(x.reshape(B, S, H).astype(jnp.float32))
    if not output_all_encoded_layers:
        all_layers.append(x.reshape(B, S, H).astype(jnp.float32))
    return all_layers


# ------------------------------------ main ---------------------------------------

if __name__ == "__main__":
    # Scaled-down BertConfig (same structure, smaller sizes; head_dim=64 like
    # BERT-base so the head-grouping / lane-density path is exercised).
    cfg = dict(
        hidden_size=256,
        num_attention_heads=4,      # head_dim = 64
        num_hidden_layers=2,
        intermediate_size=1024,     # 4 * hidden
        seq_length=128,
        initializer_range=0.02,
    )
    key = jax.random.PRNGKey(0)
    pkey, hkey = jax.random.split(key)

    params = init_params(pkey, cfg)

    B, S, H = 2, cfg["seq_length"], cfg["hidden_size"]
    hidden_states = (0.02 * jax.random.normal(hkey, (B, S, H))).astype(jnp.float32)
    attention_mask = jnp.ones((B, S), dtype=jnp.int32)

    encoded_layers = bert_encoder_forward(
        params, cfg, hidden_states, attention_mask,
        output_all_encoded_layers=True)

    jax.block_until_ready(encoded_layers)
    assert len(encoded_layers) == cfg["num_hidden_layers"]
    assert encoded_layers[-1].shape == (B, S, H)
    assert all(bool(jnp.all(jnp.isfinite(layer))) for layer in encoded_layers)
    print("KERNEL_OK")
</pallas_src>

<mosaic_0001>
module attributes {stable_mosaic.version = 11 : i64} {
  func.func @_linear_kernel(%arg0: i32, %arg1: i32, %arg2: i32, %arg3: memref<256x256xbf16, #tpu.memory_space<vmem>>, %arg4: memref<256x768xbf16, #tpu.memory_space<vmem>>, %arg5: memref<1x768xf32, #tpu.memory_space<vmem>>, %arg6: memref<256x768xbf16, #tpu.memory_space<vmem>>, %arg7: memref<256x768xf32, #tpu.memory_space<vmem>>) attributes {dimension_semantics = [#tpu.dimension_semantics<parallel>, #tpu.dimension_semantics<parallel>, #tpu.dimension_semantics<arbitrary>], iteration_bounds = array<i64: 1, 1, 1>, scalar_prefetch = 0 : i64, scratch_operands = 1 : i64, tpu.core_type = #tpu.core_type<tc>, window_params = [{transform_indices = @transform_0, window_bounds = array<i64: 256, 256>}, {transform_indices = @transform_1, window_bounds = array<i64: 256, 768>}, {transform_indices = @transform_2, window_bounds = array<i64: 1, 768>}, {transform_indices = @transform_3, window_bounds = array<i64: 256, 768>}]} {
    %c0_i32 = arith.constant 0 : i32
    %0 = arith.cmpi eq, %arg2, %c0_i32 : i32
    %1 = arith.extui %0 : i1 to i32
    %c0_i32_0 = arith.constant 0 : i32
    %2 = arith.cmpi ne, %1, %c0_i32_0 : i32
    scf.if %2 {
      %cst_10 = arith.constant 0.000000e+00 : f32
      %12 = vector.broadcast %cst_10 : f32 to vector<256x768xf32>
      %c0_11 = arith.constant 0 : index
      %c0_12 = arith.constant 0 : index
      %13 = vector.load %arg7[%c0_11, %c0_12] : memref<256x768xf32, #tpu.memory_space<vmem>>, vector<256x768xf32>
      tpu.vector_store %arg7[%c0_11, %c0_12], %12 {strides = array<i32>} : memref<256x768xf32, #tpu.memory_space<vmem>>, vector<256x768xf32>,
    } else {
    }
    %c0 = arith.constant 0 : index
    %c0_1 = arith.constant 0 : index
    %3 = vector.load %arg7[%c0, %c0_1] : memref<256x768xf32, #tpu.memory_space<vmem>>, vector<256x768xf32>
    %c0_2 = arith.constant 0 : index
    %c0_3 = arith.constant 0 : index
    %4 = vector.load %arg3[%c0_2, %c0_3] : memref<256x256xbf16, #tpu.memory_space<vmem>>, vector<256x256xbf16>
    %c0_4 = arith.constant 0 : index
    %c0_5 = arith.constant 0 : index
    %5 = vector.load %arg4[%c0_4, %c0_5] : memref<256x768xbf16, #tpu.memory_space<vmem>>, vector<256x768xbf16>
    %cst = arith.constant dense<0.000000e+00> : vector<256x768xf32>
    %6 = tpu.matmul %4, %5, %cst {dimension_numbers = #tpu.dot_dimension_numbers<[1], [0], [0], [1], [0, 0, 1, 1], [], []>} : vector<256x256xbf16>, vector<256x768xbf16>, vector<256x768xf32> -> vector<256x768xf32>
    %7 = arith.addf %3, %6 : vector<256x768xf32>
    %c0_6 = arith.constant 0 : index
    %c0_7 = arith.constant 0 : index
    %8 = vector.load %arg7[%c0_6, %c0_7] : memref<256x768xf32, #tpu.memory_space<vmem>>, vector<256x768xf32>
    tpu.vector_store %arg7[%c0_6, %c0_7], %7 {strides = array<i32>} : memref<256x768xf32, #tpu.memory_space<vmem>>, vector<256x768xf32>,
    %c0_i32_8 = arith.constant 0 : i32
    %9 = arith.cmpi eq, %arg2, %c0_i32_8 : i32
    %10 = arith.extui %9 : i1 to i32
    %c0_i32_9 = arith.constant 0 : i32
    %11 = arith.cmpi ne, %10, %c0_i32_9 : i32
    scf.if %11 {
      %c0_10 = arith.constant 0 : index
      %c0_11 = arith.constant 0 : index
      %12 = vector.load %arg7[%c0_10, %c0_11] : memref<256x768xf32, #tpu.memory_space<vmem>>, vector<256x768xf32>
      %c0_12 = arith.constant 0 : index
      %c0_13 = arith.constant 0 : index
      %13 = vector.load %arg5[%c0_12, %c0_13] : memref<1x768xf32, #tpu.memory_space<vmem>>, vector<1x768xf32>
      %14 = vector.broadcast %13 : vector<1x768xf32> to vector<256x768xf32>
      %15 = arith.addf %12, %14 : vector<256x768xf32>
      %16 = arith.truncf %15 : vector<256x768xf32> to vector<256x768xbf16>
      %c0_14 = arith.constant 0 : index
      %c0_15 = arith.constant 0 : index
      %17 = vector.load %arg6[%c0_14, %c0_15] : memref<256x768xbf16, #tpu.memory_space<vmem>>, vector<256x768xbf16>
      tpu.vector_store %arg6[%c0_14, %c0_15], %16 {strides = array<i32>} : memref<256x768xbf16, #tpu.memory_space<vmem>>, vector<256x768xbf16>,
    } else {
    }
    return
  }
  func.func @transform_0(%arg0: i32, %arg1: i32, %arg2: i32) -> (i32, i32) {
    %c0_i32 = arith.constant 0 : i32
    return %arg0, %arg2 : i32, i32
  }
  func.func @transform_1(%arg0: i32, %arg1: i32, %arg2: i32) -> (i32, i32) {
    %c0_i32 = arith.constant 0 : i32
    return %arg2, %arg1 : i32, i32
  }
  func.func @transform_2(%arg0: i32, %arg1: i32, %arg2: i32) -> (i32, i32) {
    %c0_i32 = arith.constant 0 : i32
    %c0_i32_0 = arith.constant 0 : i32
    return %c0_i32, %arg1 : i32, i32
  }
  func.func @transform_3(%arg0: i32, %arg1: i32, %arg2: i32) -> (i32, i32) {
    %c0_i32 = arith.constant 0 : i32
    return %arg0, %arg1 : i32, i32
  }
}

</mosaic_0001>

<bundles_post_ra>
// kernel: tpu_custom_call.1
= control target key start
LH: loop header
LB: loop body
LE: loop exit
PB: predicated region body
PF: predicated region fallthrough
CT: control target
= control target key end

     0   :  { %8 = vsyncpa [#allocation4], 0  ;;  %s4320_s0 = inlined_call_operand.hbm [shape: bf16[256,256], index: 0, kind: input, shape index: {}]   ;;  %s4321_s1 = inlined_call_operand.hbm [shape: bf16[256,768], index: 1, kind: input, shape index: {}]   ;;  %s4322_s2 = inlined_call_operand.vmem [shape: f32[1,768], index: 2, kind: input, shape index: {}]   ;;  %s4323_s3 = inlined_call_operand.hbm [shape: bf16[256,768], index: 3, kind: output, shape index: {}]  }
   0x1   :  { %9 = vsyncpa [#allocation7], 0 }
   0x2   :  { %10 = vsyncpa [#allocation5], 0  ;;  %s3894_s12 = smov [#allocation3]   ;;  %s3822_s16 = scalar_lea.hbm %s4320_s0, 4096 }
   0x3   :  { %s16_s13 = sshll.u32 %s3894_s12, 4  ;;  %p3823_p0 = scmp.ne.s32.totalorder %s4320_s0, %s3822_s16  ;;  %s17_s13 = int_to_ptr.vmem [resolvable:$true] %s16_s13 }
   0x4   :  { %p3826_p1 = scmp.lt.u32.totalorder %s3822_s16, %s4320_s0 }
   0x6   :  { %p3828_p2 = pnand %p3826_p1, %p3823_p0 }
   0x8   :  { %3831 = shalt.err (!%p3828_p2)
}
   0x9   :  { %s3832_s21 = scalar_lea.vmem %s17_s13, 4096  ;;  %p3837_p4 = scmp.lt.s32.totalorder %s17_s13, %s17_s13 }
   0xa   :  { %p3833_p3 = scmp.ne.s32.totalorder %s17_s13, %s3832_s21  ;;  %p3838_p5 = scmp.lt.s32.totalorder %s3832_s21, %s3832_s21 }
   0xc   :  { %p3839_p6 = por %p3838_p5, %p3837_p4 }
   0xe   :  { %p3840_p7 = pnand %p3839_p6, %p3833_p3 }
  0x10   :  { %3843 = shalt.err (!%p3840_p7)
}
  0x11   :  { %s3895_s22 = smov 128   ;;  %s3896_s23 = smov 8  }
  0x12   :  { %22 = dma.hbm_to_vmem [thread:$0]  %s4320_s0, 4096, %s17_s13, [#allocation4], %s3895_s22, %s3895_s22, %s3896_s23  }
  0x13   :  { %s3897_s26 = smov [#allocation6]   ;;  %s3844_s30 = scalar_lea.hbm %s4321_s1, 12288 }
  0x14   :  { %s28_s27 = sshll.u32 %s3897_s26, 4  ;;  %p3845_p8 = scmp.ne.s32.totalorder %s4321_s1, %s3844_s30  ;;  %s29_s27 = int_to_ptr.vmem [resolvable:$true] %s28_s27 }
  0x15   :  { %p3848_p9 = scmp.lt.u32.totalorder %s3844_s30, %s4321_s1 }
  0x17   :  { %p3850_p10 = pnand %p3848_p9, %p3845_p8 }
  0x19   :  { %3853 = shalt.err (!%p3850_p10)
}
  0x1a   :  { %s3854_s8 = scalar_lea.vmem %s29_s27, 12288  ;;  %p3859_p12 = scmp.lt.s32.totalorder %s29_s27, %s29_s27 }
  0x1b   :  { %p3855_p11 = scmp.ne.s32.totalorder %s29_s27, %s3854_s8  ;;  %p3860_p13 = scmp.lt.s32.totalorder %s3854_s8, %s3854_s8 }
  0x1d   :  { %p3861_p0 = por %p3860_p13, %p3859_p12 }
  0x1f   :  { %p3862_p1 = pnand %p3861_p0, %p3855_p11 }
  0x21   :  { %3865 = shalt.err (!%p3862_p1)
}
  0x22   :  { %s3898_s0 = smov 384   ;;  %s3899_s9 = smov 24  }
  0x23   :  { %34 = dma.hbm_to_vmem [thread:$0]  %s4321_s1, 12288, %s29_s27, [#allocation7], %s3898_s0, %s3898_s0, %s3899_s9  }
  0x24   :  { %3888 = dma.done.wait [#allocation4], 4096  }
  0x25   :  { %3889 = vsyncadd [#allocation4], 4294963200 }
  0x26   :  { %3890 = dma.done.wait [#allocation7], 12288  }
  0x27   :  { %3891 = vsyncadd [#allocation7], 4294955008  ;;  %v3630_v0 = vld [vmem:[#allocation6 + $0x4] ss:$24 sps:$4 sm:$0xff]   ;;  %v3632_v1 = vld [vmem:[#allocation6] ss:$24 sps:$4 sm:$0xff]  }
  0x28   :  { %1199 = vmatprep.subr.bf16.mxu0 %v3630_v0  ;;  %3591 = vmatprep.subr.bf16.mxu1 %v3630_v0  ;;  %v3633_v2 = vld [vmem:[#allocation6 + $0x34] ss:$24 sps:$4 sm:$0xff]   ;;  %v3635_v3 = vld [vmem:[#allocation6 + $0x30] ss:$24 sps:$4 sm:$0xff]   ;;  %v3636_v4 = vld [vmem:[#allocation6 + $0x64] ss:$24 sps:$4 sm:$0xff]  }
  0x29   :  { %1200 = vmatpush1.bf16.msra.mxu0 %v3632_v1  ;;  %3607 = vmatpush1.bf16.msra.mxu1 %v3632_v1  ;;  %v3638_v5 = vld [vmem:[#allocation6 + $0x60] ss:$24 sps:$4 sm:$0xff]   ;;  %v3639_v6 = vld [vmem:[#allocation6 + $0x94] ss:$24 sps:$4 sm:$0xff]   ;;  %v3641_v7 = vld [vmem:[#allocation6 + $0x90] ss:$24 sps:$4 sm:$0xff]  }
  0x2a   :  { %1201 = vmatprep.subr.bf16.mxu0 %v3633_v2  ;;  %3592 = vmatprep.subr.bf16.mxu1 %v3633_v2  ;;  %v3642_v8 = vld [vmem:[#allocation6 + $0xc4] ss:$24 sps:$4 sm:$0xff]   ;;  %v3644_v9 = vld [vmem:[#allocation6 + $0xc0] ss:$24 sps:$4 sm:$0xff]   ;;  %v3645_v10 = vld [vmem:[#allocation6 + $0xf4] ss:$24 sps:$4 sm:$0xff]  }
  0x2b   :  { %v3647_v11 = vld [vmem:[#allocation6 + $0xf0] ss:$24 sps:$4 sm:$0xff]   ;;  %v3648_v12 = vld [vmem:[#allocation6 + $0x124] ss:$24 sps:$4 sm:$0xff]   ;;  %v3650_v14 = vld [vmem:[#allocation6 + $0x120] ss:$24 sps:$4 sm:$0xff]  }
  0x2c   :  { %v3948_v13 = vld [vmem:[#allocation3 + $0x4] ss:$8 sps:$4 sm:$0xff]   ;;  %v3653_v17 = vld [vmem:[#allocation6 + $0x150] ss:$24 sps:$4 sm:$0xff]   ;;  %v3656_v19 = vld [vmem:[#allocation6 + $0x180] ss:$24 sps:$4 sm:$0xff]  }
  0x2d   :  { %1202 = vmatpush1.bf16.msra.mxu0 %v3635_v3  ;;  %3608 = vmatpush1.bf16.msra.mxu1 %v3635_v3  ;;  %v3950_v15 = vld [vmem:[#allocation3 + $0x84] ss:$8 sps:$4 sm:$0xff]   ;;  %v3659_v21 = vld [vmem:[#allocation6 + $0x1b0] ss:$24 sps:$4 sm:$0xff]   ;;  %v3662_v23 = vld [vmem:[#allocation6 + $0x1e0] ss:$24 sps:$4 sm:$0xff]  }
  0x2e   :  { %1203 = vmatprep.subr.bf16.mxu0 %v3636_v4  ;;  %3593 = vmatprep.subr.bf16.mxu1 %v3636_v4  ;;  %v3651_v16 = vld [vmem:[#allocation6 + $0x154] ss:$24 sps:$4 sm:$0xff]   ;;  %v3654_v18 = vld [vmem:[#allocation6 + $0x184] ss:$24 sps:$4 sm:$0xff]   ;;  %v3665_v25 = vld [vmem:[#allocation6 + $0x210] ss:$24 sps:$4 sm:$0xff]  }
  0x2f   :  { %1231 = vmatprep.mubr.bf16.mxu0 %v3948_v13  ;;  %1311 = vmatprep.mubr.bf16.mxu1 %v3950_v15  ;;  %v3657_v20 = vld [vmem:[#allocation6 + $0x1b4] ss:$24 sps:$4 sm:$0xff]   ;;  %v3660_v22 = vld [vmem:[#allocation6 + $0x1e4] ss:$24 sps:$4 sm:$0xff]   ;;  %v3668_v27 = vld [vmem:[#allocation6 + $0x240] ss:$24 sps:$4 sm:$0xff]  }
  0x30   :  { %v3663_v24 = vld [vmem:[#allocation6 + $0x214] ss:$24 sps:$4 sm:$0xff]   ;;  %v3666_v26 = vld [vmem:[#allocation6 + $0x244] ss:$24 sps:$4 sm:$0xff]   ;;  %v3671_v29 = vld [vmem:[#allocation6 + $0x270] ss:$24 sps:$4 sm:$0xff]  }
  0x31   :  { %1204 = vmatpush1.bf16.msra.mxu0 %v3638_v5  ;;  %3609 = vmatpush1.bf16.msra.mxu1 %v3638_v5  ;;  %v3669_v28 = vld [vmem:[#allocation6 + $0x274] ss:$24 sps:$4 sm:$0xff]   ;;  %v3672_v30 = vld [vmem:[#allocation6 + $0x2a4] ss:$24 sps:$4 sm:$0xff]   ;;  %v3674_v31 = vld [vmem:[#allocation6 + $0x2a0] ss:$24 sps:$4 sm:$0xff]  }
  0x32   :  { %1205 = vmatprep.subr.bf16.mxu0 %v3639_v6  ;;  %3594 = vmatprep.subr.bf16.mxu1 %v3639_v6  ;;  %v3675_v32 = vld [vmem:[#allocation6 + $0x2d4] ss:$24 sps:$4 sm:$0xff]   ;;  %v3677_v33 = vld [vmem:[#allocation6 + $0x2d0] ss:$24 sps:$4 sm:$0xff]   ;;  %v3695_v41 = vld [vmem:[#allocation6 + $0x44] ss:$24 sps:$4 sm:$0xff]  }
  0x33   :  { %v3686_v34 = vld [vmem:[#allocation6 + $0xc] ss:$24 sps:$4 sm:$0xff]   ;;  %v3954_v35 = vld [vmem:[#allocation3] ss:$8 sps:$4 sm:$0xff]   ;;  %v3692_v40 = vld [vmem:[#allocation6 + $0x3c] ss:$24 sps:$4 sm:$0xff]  }
  0x34   :  { %v3689_v36 = vld [vmem:[#allocation6 + $0x14] ss:$24 sps:$4 sm:$0xff]   ;;  %v3956_v37 = vld [vmem:[#allocation3 + $0x80] ss:$8 sps:$4 sm:$0xff]   ;;  %v3690_v44 = vld [vmem:[#allocation6 + $0x38] ss:$24 sps:$4 sm:$0xff]  }
  0x35   :  { %1206 = vmatpush1.bf16.msra.mxu0 %v3641_v7  ;;  %3610 = vmatpush1.bf16.msra.mxu1 %v3641_v7  ;;  %v3684_v38 = vld [vmem:[#allocation6 + $0x8] ss:$24 sps:$4 sm:$0xff]   ;;  %v3958_v42 = vld [vmem:[#allocation3 + $0x14] ss:$8 sps:$4 sm:$0xff]   ;;  %v3704_v46 = vld [vmem:[#allocation6 + $0x6c] ss:$24 sps:$4 sm:$0xff]  }
  0x36   :  { %1207 = vmatprep.subr.bf16.mxu0 %v3642_v8  ;;  %3595 = vmatprep.subr.bf16.mxu1 %v3642_v8  ;;  %v3687_v39 = vld [vmem:[#allocation6 + $0x10] ss:$24 sps:$4 sm:$0xff]   ;;  %v3960_v43 = vld [vmem:[#allocation3 + $0x94] ss:$8 sps:$4 sm:$0xff]   ;;  %v3693_v45 = vld [vmem:[#allocation6 + $0x40] ss:$24 sps:$4 sm:$0xff]  }
  0x37   :  { %v3964_v47 = vld [vmem:[#allocation3 + $0x10] ss:$8 sps:$4 sm:$0xff]   ;;  %v3707_v48 = vld [vmem:[#allocation6 + $0x74] ss:$24 sps:$4 sm:$0xff]   ;;  %v3702_v50 = vld [vmem:[#allocation6 + $0x68] ss:$24 sps:$4 sm:$0xff]  }
  0x38   :  { %v3968_v49 = vld [vmem:[#allocation3 + $0x90] ss:$8 sps:$4 sm:$0xff]   ;;  %v3710_v52 = vld [vmem:[#allocation6 + $0x9c] ss:$24 sps:$4 sm:$0xff]   ;;  %v3970_v54 = vld [vmem:[#allocation3 + $0x24] ss:$8 sps:$4 sm:$0xff]  }
  0x39   :  { %1208 = vmatpush1.bf16.msra.mxu0 %v3644_v9  ;;  %3611 = vmatpush1.bf16.msra.mxu1 %v3644_v9  ;;  %v3705_v51 = vld [vmem:[#allocation6 + $0x70] ss:$24 sps:$4 sm:$0xff]   ;;  %v3713_v53 = vld [vmem:[#allocation6 + $0xa4] ss:$24 sps:$4 sm:$0xff]   ;;  %v3711_v57 = vld [vmem:[#allocation6 + $0xa0] ss:$24 sps:$4 sm:$0xff]  }
  0x3a   :  { %1209 = vmatprep.subr.bf16.mxu0 %v3645_v10  ;;  %3596 = vmatprep.subr.bf16.mxu1 %v3645_v10  ;;  %v3972_v55 = vld [vmem:[#allocation3 + $0xa4] ss:$8 sps:$4 sm:$0xff]   ;;  %v3708_v56 = vld [vmem:[#allocation6 + $0x98] ss:$24 sps:$4 sm:$0xff]   ;;  %v3976_v59 = vld [vmem:[#allocation3 + $0x20] ss:$8 sps:$4 sm:$0xff]  }
  0x3b   :  { %v3722_v58 = vld [vmem:[#allocation6 + $0xcc] ss:$24 sps:$4 sm:$0xff]   ;;  %v3980_v61 = vld [vmem:[#allocation3 + $0xa0] ss:$8 sps:$4 sm:$0xff]   ;;  %v3728_v0 = vld [vmem:[#allocation6 + $0xfc] ss:$24 sps:$4 sm:$0xff]  }
  0x3c   :  { %v3725_v60 = vld [vmem:[#allocation6 + $0xd4] ss:$24 sps:$4 sm:$0xff]   ;;  %v3720_v62 = vld [vmem:[#allocation6 + $0xc8] ss:$24 sps:$4 sm:$0xff]   ;;  %v3731_v1 = vld [vmem:[#allocation6 + $0x104] ss:$24 sps:$4 sm:$0xff]  }
  0x3d   :  { %1210 = vmatpush1.bf16.msra.mxu0 %v3647_v11  ;;  %3612 = vmatpush1.bf16.msra.mxu1 %v3647_v11  ;;  %v3723_v63 = vld [vmem:[#allocation6 + $0xd0] ss:$24 sps:$4 sm:$0xff]   ;;  %v3982_v2 = vld [vmem:[#allocation3 + $0x34] ss:$8 sps:$4 sm:$0xff]   ;;  %v3729_v5 = vld [vmem:[#allocation6 + $0x100] ss:$24 sps:$4 sm:$0xff]  }
  0x3e   :  { %1211 = vmatprep.subr.bf16.mxu0 %v3648_v12  ;;  %3597 = vmatprep.subr.bf16.mxu1 %v3648_v12  ;;  %v3984_v3 = vld [vmem:[#allocation3 + $0xb4] ss:$8 sps:$4 sm:$0xff]   ;;  %v3726_v4 = vld [vmem:[#allocation6 + $0xf8] ss:$24 sps:$4 sm:$0xff]   ;;  %v3740_v6 = vld [vmem:[#allocation6 + $0x12c] ss:$24 sps:$4 sm:$0xff]  }
  0x3f   :  { %v3743_v7 = vld [vmem:[#allocation6 + $0x134] ss:$24 sps:$4 sm:$0xff]   ;;  %v3990_v8 = vld [vmem:[#allocation3 + $0x30] ss:$8 sps:$4 sm:$0xff]   ;;  %v3738_v10 = vld [vmem:[#allocation6 + $0x128] ss:$24 sps:$4 sm:$0xff]  }
  0x40   :  { %v3992_v9 = vld [vmem:[#allocation3 + $0xb0] ss:$8 sps:$4 sm:$0xff]   ;;  %v3746_v12 = vld [vmem:[#allocation6 + $0x15c] ss:$24 sps:$4 sm:$0xff]  }
  0x41   :  { %1212 = vmatpush1.bf16.msra.mxu0 %v3650_v14  ;;  %3613 = vmatpush1.bf16.msra.mxu1 %v3650_v14  ;;  %v3741_v11 = vld [vmem:[#allocation6 + $0x130] ss:$24 sps:$4 sm:$0xff]   ;;  %v3749_v14 = vld [vmem:[#allocation6 + $0x164] ss:$24 sps:$4 sm:$0xff]  }
  0x42   :  { %1213 = vmatprep.subr.bf16.mxu0 %v3651_v16  ;;  %3598 = vmatprep.subr.bf16.mxu1 %v3651_v16  ;;  %v3994_v16 = vld [vmem:[#allocation3 + $0x44] ss:$8 sps:$4 sm:$0xff]  }
  0x45   :  { %1214 = vmatpush1.bf16.msra.mxu0 %v3653_v17  ;;  %3614 = vmatpush1.bf16.msra.mxu1 %v3653_v17  ;;  %v3996_v17 = vld [vmem:[#allocation3 + $0xc4] ss:$8 sps:$4 sm:$0xff]  }
  0x46   :  { %1215 = vmatprep.subr.bf16.mxu0 %v3654_v18  ;;  %3599 = vmatprep.subr.bf16.mxu1 %v3654_v18  ;;  %v3744_v18 = vld [vmem:[#allocation6 + $0x158] ss:$24 sps:$4 sm:$0xff]  }
  0x49   :  { %1216 = vmatpush1.bf16.msra.mxu0 %v3656_v19  ;;  %3615 = vmatpush1.bf16.msra.mxu1 %v3656_v19  ;;  %v3747_v19 = vld [vmem:[#allocation6 + $0x160] ss:$24 sps:$4 sm:$0xff]  }
  0x4a   :  { %1217 = vmatprep.subr.bf16.mxu0 %v3657_v20  ;;  %3600 = vmatprep.subr.bf16.mxu1 %v3657_v20  ;;  %v3758_v20 = vld [vmem:[#allocation6 + $0x18c] ss:$24 sps:$4 sm:$0xff]  }
  0x4d   :  { %1218 = vmatpush1.bf16.msra.mxu0 %v3659_v21  ;;  %3616 = vmatpush1.bf16.msra.mxu1 %v3659_v21  ;;  %v3761_v21 = vld [vmem:[#allocation6 + $0x194] ss:$24 sps:$4 sm:$0xff]  }
  0x4e   :  { %1219 = vmatprep.subr.bf16.mxu0 %v3660_v22  ;;  %3601 = vmatprep.subr.bf16.mxu1 %v3660_v22  ;;  %v4002_v22 = vld [vmem:[#allocation3 + $0x40] ss:$8 sps:$4 sm:$0xff]  }
  0x51   :  { %1220 = vmatpush1.bf16.msra.mxu0 %v3662_v23  ;;  %3617 = vmatpush1.bf16.msra.mxu1 %v3662_v23  ;;  %v4004_v23 = vld [vmem:[#allocation3 + $0xc0] ss:$8 sps:$4 sm:$0xff]  }
  0x52   :  { %1221 = vmatprep.subr.bf16.mxu0 %v3663_v24  ;;  %3602 = vmatprep.subr.bf16.mxu1 %v3663_v24  ;;  %v3756_v24 = vld [vmem:[#allocation6 + $0x188] ss:$24 sps:$4 sm:$0xff]  }
  0x55   :  { %1222 = vmatpush1.bf16.msra.mxu0 %v3665_v25  ;;  %3618 = vmatpush1.bf16.msra.mxu1 %v3665_v25  ;;  %v3759_v25 = vld [vmem:[#allocation6 + $0x190] ss:$24 sps:$4 sm:$0xff]  }
  0x56   :  { %1223 = vmatprep.subr.bf16.mxu0 %v3666_v26  ;;  %3603 = vmatprep.subr.bf16.mxu1 %v3666_v26  ;;  %v3764_v26 = vld [vmem:[#allocation6 + $0x1bc] ss:$24 sps:$4 sm:$0xff]  }
  0x59   :  { %1224 = vmatpush1.bf16.msra.mxu0 %v3668_v27  ;;  %3619 = vmatpush1.bf16.msra.mxu1 %v3668_v27  ;;  %v3767_v27 = vld [vmem:[#allocation6 + $0x1c4] ss:$24 sps:$4 sm:$0xff]  }
  0x5a   :  { %1225 = vmatprep.subr.bf16.mxu0 %v3669_v28  ;;  %3604 = vmatprep.subr.bf16.mxu1 %v3669_v28  ;;  %v4006_v28 = vld [vmem:[#allocation3 + $0x54] ss:$8 sps:$4 sm:$0xff]  }
  0x5d   :  { %1226 = vmatpush1.bf16.msra.mxu0 %v3671_v29  ;;  %3620 = vmatpush1.bf16.msra.mxu1 %v3671_v29  ;;  %v4008_v29 = vld [vmem:[#allocation3 + $0xd4] ss:$8 sps:$4 sm:$0xff]  }
  0x5e   :  { %1227 = vmatprep.subr.bf16.mxu0 %v3672_v30  ;;  %3605 = vmatprep.subr.bf16.mxu1 %v3672_v30  ;;  %v3762_v30 = vld [vmem:[#allocation6 + $0x1b8] ss:$24 sps:$4 sm:$0xff]  }
  0x61   :  { %1228 = vmatpush1.bf16.msra.mxu0 %v3674_v31  ;;  %3621 = vmatpush1.bf16.msra.mxu1 %v3674_v31  ;;  %v3765_v31 = vld [vmem:[#allocation6 + $0x1c0] ss:$24 sps:$4 sm:$0xff]  }
  0x62   :  { %1229 = vmatprep.subr.bf16.mxu0 %v3675_v32  ;;  %3606 = vmatprep.subr.bf16.mxu1 %v3675_v32  ;;  %v3776_v32 = vld [vmem:[#allocation6 + $0x1ec] ss:$24 sps:$4 sm:$0xff]  }
  0x65   :  { %1230 = vmatpush1.bf16.msra.mxu0 %v3677_v33  ;;  %3622 = vmatpush1.bf16.msra.mxu1 %v3677_v33  ;;  %v3779_v33 = vld [vmem:[#allocation6 + $0x1f4] ss:$24 sps:$4 sm:$0xff]  }
  0x66   :  { %1392 = vmatprep.subr.bf16.mxu1 %v3686_v34  ;;  %1585 = vmatprep.subr.bf16.mxu0 %v3689_v36  ;;  %v4014_v34 = vld [vmem:[#allocation3 + $0x50] ss:$8 sps:$4 sm:$0xff]  }
  0x67   :  { %v4016_v36 = vld [vmem:[#allocation3 + $0xd0] ss:$8 sps:$4 sm:$0xff]  }
  0x68   :  { %1232 = vmatmul.mubr.bf16.vlgmr.msra.gmra.mrb[0].mxu0 %v3954_v35  ;;  %1312 = vmatmul.mubr.bf16.vlgmr.msra.gmra.mrb[0].mxu1 %v3956_v37 }
  0x69   :  { %1393 = vmatpush1.bf16.msra.mxu1 %v3684_v38  ;;  %1586 = vmatpush1.bf16.msra.mxu0 %v3687_v39  ;;  %v3774_v38 = vld [vmem:[#allocation6 + $0x1e8] ss:$24 sps:$4 sm:$0xff]  }
  0x6a   :  { %1394 = vmatprep.subr.bf16.mxu1 %v3692_v40  ;;  %1587 = vmatprep.subr.bf16.mxu0 %v3695_v41  ;;  %v3777_v39 = vld [vmem:[#allocation6 + $0x1f0] ss:$24 sps:$4 sm:$0xff]   ;;  %v3782_v40 = vld [vmem:[#allocation6 + $0x21c] ss:$24 sps:$4 sm:$0xff]  }
  0x6b   :  { %1241 = vmatprep.mubr.bf16.mxu0 %v3958_v42  ;;  %1321 = vmatprep.mubr.bf16.mxu1 %v3960_v43  ;;  %v3785_v41 = vld [vmem:[#allocation6 + $0x224] ss:$24 sps:$4 sm:$0xff]  }
  0x6d   :  { %1395 = vmatpush1.bf16.msra.mxu1 %v3690_v44  ;;  %1588 = vmatpush1.bf16.msra.mxu0 %v3693_v45  ;;  %v4018_v44 = vld [vmem:[#allocation3 + $0x64] ss:$8 sps:$4 sm:$0xff]  }
  0x6e   :  { %1396 = vmatprep.subr.bf16.mxu1 %v3704_v46  ;;  %1589 = vmatprep.subr.bf16.mxu0 %v3707_v48  ;;  %v4020_v45 = vld [vmem:[#allocation3 + $0xe4] ss:$8 sps:$4 sm:$0xff]   ;;  %v3780_v46 = vld [vmem:[#allocation6 + $0x218] ss:$24 sps:$4 sm:$0xff]  }
  0x6f   :  { %v3783_v48 = vld [vmem:[#allocation6 + $0x220] ss:$24 sps:$4 sm:$0xff]  }
  0x70   :  { %1242 = vmatmul.mubr.bf16.gmra.mrb[4].mxu0 %v3964_v47  ;;  %1322 = vmatmul.mubr.bf16.gmra.mrb[4].mxu1 %v3968_v49 }
  0x71   :  { %1397 = vmatpush1.bf16.msra.mxu1 %v3702_v50  ;;  %1590 = vmatpush1.bf16.msra.mxu0 %v3705_v51  ;;  %v3794_v50 = vld [vmem:[#allocation6 + $0x24c] ss:$24 sps:$4 sm:$0xff]  }
  0x72   :  { %1398 = vmatprep.subr.bf16.mxu1 %v3710_v52  ;;  %1591 = vmatprep.subr.bf16.mxu0 %v3713_v53  ;;  %v3797_v51 = vld [vmem:[#allocation6 + $0x254] ss:$24 sps:$4 sm:$0xff]   ;;  %v4026_v52 = vld [vmem:[#allocation3 + $0x60] ss:$8 sps:$4 sm:$0xff]  }
  0x73   :  { %1251 = vmatprep.mubr.bf16.mxu0 %v3970_v54  ;;  %1331 = vmatprep.mubr.bf16.mxu1 %v3972_v55  ;;  %v4028_v53 = vld [vmem:[#allocation3 + $0xe0] ss:$8 sps:$4 sm:$0xff]  }
  0x75   :  { %1399 = vmatpush1.bf16.msra.mxu1 %v3708_v56  ;;  %1592 = vmatpush1.bf16.msra.mxu0 %v3711_v57  ;;  %v3792_v56 = vld [vmem:[#allocation6 + $0x248] ss:$24 sps:$4 sm:$0xff]  }
  0x76   :  { %1400 = vmatprep.subr.bf16.mxu1 %v3722_v58  ;;  %1593 = vmatprep.subr.bf16.mxu0 %v3725_v60  ;;  %v3795_v57 = vld [vmem:[#allocation6 + $0x250] ss:$24 sps:$4 sm:$0xff]   ;;  %v3800_v58 = vld [vmem:[#allocation6 + $0x27c] ss:$24 sps:$4 sm:$0xff]  }
  0x77   :  { %v3803_v60 = vld [vmem:[#allocation6 + $0x284] ss:$24 sps:$4 sm:$0xff]  }
  0x78   :  { %1252 = vmatmul.mubr.bf16.gmra.mrb[8].mxu0 %v3976_v59  ;;  %1332 = vmatmul.mubr.bf16.gmra.mrb[8].mxu1 %v3980_v61 }
  0x79   :  { %1401 = vmatpush1.bf16.msra.mxu1 %v3720_v62  ;;  %1594 = vmatpush1.bf16.msra.mxu0 %v3723_v63  ;;  %v3804_v62 = vld [vmem:[#allocation3 + $0x74] ss:$8 sps:$4 sm:$0xff]  }
  0x7a   :  { %1402 = vmatprep.subr.bf16.mxu1 %v3728_v0  ;;  %1595 = vmatprep.subr.bf16.mxu0 %v3731_v1  ;;  %v4030_v63 = vld [vmem:[#allocation3 + $0xf4] ss:$8 sps:$4 sm:$0xff]   ;;  %v3798_v0 = vld [vmem:[#allocation6 + $0x278] ss:$24 sps:$4 sm:$0xff]  }
  0x7b   :  { %1261 = vmatprep.mubr.bf16.mxu0 %v3982_v2  ;;  %1341 = vmatprep.mubr.bf16.mxu1 %v3984_v3  ;;  %v3801_v1 = vld [vmem:[#allocation6 + $0x280] ss:$24 sps:$4 sm:$0xff]  }
  0x7d   :  { %1403 = vmatpush1.bf16.msra.mxu1 %v3726_v4  ;;  %1596 = vmatpush1.bf16.msra.mxu0 %v3729_v5  ;;  %v3812_v4 = vld [vmem:[#allocation6 + $0x2ac] ss:$24 sps:$4 sm:$0xff]  }
  0x7e   :  { %1404 = vmatprep.subr.bf16.mxu1 %v3740_v6  ;;  %1597 = vmatprep.subr.bf16.mxu0 %v3743_v7  ;;  %v3815_v5 = vld [vmem:[#allocation6 + $0x2b4] ss:$24 sps:$4 sm:$0xff]   ;;  %v3808_v6 = vld [vmem:[#allocation3 + $0x70] ss:$8 sps:$4 sm:$0xff]  }
  0x7f   :  { %v4035_v7 = vld [vmem:[#allocation3 + $0xf0] ss:$8 sps:$4 sm:$0xff]  }
  0x80   :  { %1262 = vmatmul.mubr.bf16.gmra.mrb[12].mxu0 %v3990_v8  ;;  %1342 = vmatmul.mubr.bf16.gmra.mrb[12].mxu1 %v3992_v9 }
  0x81   :  { %1405 = vmatpush1.bf16.msra.mxu1 %v3738_v10  ;;  %1598 = vmatpush1.bf16.msra.mxu0 %v3741_v11  ;;  %v3810_v10 = vld [vmem:[#allocation6 + $0x2a8] ss:$24 sps:$4 sm:$0xff]  }
  0x82   :  { %1406 = vmatprep.subr.bf16.mxu1 %v3746_v12  ;;  %1599 = vmatprep.subr.bf16.mxu0 %v3749_v14  ;;  %v3813_v11 = vld [vmem:[#allocation6 + $0x2b0] ss:$24 sps:$4 sm:$0xff]   ;;  %v3818_v12 = vld [vmem:[#allocation6 + $0x2dc] ss:$24 sps:$4 sm:$0xff]  }
  0x83   :  { %1271 = vmatprep.mubr.bf16.mxu0 %v3994_v16  ;;  %1351 = vmatprep.mubr.bf16.mxu1 %v3996_v17  ;;  %v3821_v14 = vld [vmem:[#allocation6 + $0x2e4] ss:$24 sps:$4 sm:$0xff]  }
  0x85   :  { %1407 = vmatpush1.bf16.msra.mxu1 %v3744_v18  ;;  %1600 = vmatpush1.bf16.msra.mxu0 %v3747_v19  ;;  %v3816_v18 = vld [vmem:[#allocation6 + $0x2d8] ss:$24 sps:$4 sm:$0xff]  }
  0x86   :  { %1408 = vmatprep.subr.bf16.mxu1 %v3758_v20  ;;  %1601 = vmatprep.subr.bf16.mxu0 %v3761_v21  ;;  %v3819_v19 = vld [vmem:[#allocation6 + $0x2e0] ss:$24 sps:$4 sm:$0xff]  }
  0x88   :  { %1272 = vmatmul.mubr.bf16.gmra.mrb[16].mxu0 %v4002_v22  ;;  %1352 = vmatmul.mubr.bf16.gmra.mrb[16].mxu1 %v4004_v23 }
  0x89   :  { %1409 = vmatpush1.bf16.msra.mxu1 %v3756_v24  ;;  %1602 = vmatpush1.bf16.msra.mxu0 %v3759_v25 }
  0x8a   :  { %1410 = vmatprep.subr.bf16.mxu1 %v3764_v26  ;;  %1603 = vmatprep.subr.bf16.mxu0 %v3767_v27 }
  0x8b   :  { %1281 = vmatprep.mubr.bf16.mxu0 %v4006_v28  ;;  %1361 = vmatprep.mubr.bf16.mxu1 %v4008_v29 }
  0x8d   :  { %1411 = vmatpush1.bf16.msra.mxu1 %v3762_v30  ;;  %1604 = vmatpush1.bf16.msra.mxu0 %v3765_v31 }
  0x8e   :  { %1412 = vmatprep.subr.bf16.mxu1 %v3776_v32  ;;  %1605 = vmatprep.subr.bf16.mxu0 %v3779_v33 }
  0x90   :  { %1282 = vmatmul.mubr.bf16.gmra.mrb[20].mxu0 %v4014_v34  ;;  %1362 = vmatmul.mubr.bf16.gmra.mrb[20].mxu1 %v4016_v36 }
  0x91   :  { %1413 = vmatpush1.bf16.msra.mxu1 %v3774_v38  ;;  %1606 = vmatpush1.bf16.msra.mxu0 %v3777_v39 }
  0x92   :  { %1414 = vmatprep.subr.bf16.mxu1 %v3782_v40  ;;  %1607 = vmatprep.subr.bf16.mxu0 %v3785_v41 }
  0x93   :  { %1291 = vmatprep.mubr.bf16.mxu0 %v4018_v44  ;;  %1371 = vmatprep.mubr.bf16.mxu1 %v4020_v45 }
  0x95   :  { %1415 = vmatpush1.bf16.msra.mxu1 %v3780_v46  ;;  %1608 = vmatpush1.bf16.msra.mxu0 %v3783_v48 }
  0x96   :  { %1416 = vmatprep.subr.bf16.mxu1 %v3794_v50  ;;  %1609 = vmatprep.subr.bf16.mxu0 %v3797_v51 }
  0x98   :  { %1292 = vmatmul.mubr.bf16.gmra.mrb[24].mxu0 %v4026_v52  ;;  %1372 = vmatmul.mubr.bf16.gmra.mrb[24].mxu1 %v4028_v53 }
  0x99   :  { %1417 = vmatpush1.bf16.msra.mxu1 %v3792_v56  ;;  %1610 = vmatpush1.bf16.msra.mxu0 %v3795_v57 }
  0x9a   :  { %1418 = vmatprep.subr.bf16.mxu1 %v3800_v58  ;;  %1611 = vmatprep.subr.bf16.mxu0 %v3803_v60 }
  0x9b   :  { %1301 = vmatprep.mubr.bf16.mxu0 %v3804_v62  ;;  %1381 = vmatprep.mubr.bf16.mxu1 %v4030_v63 }
  0x9d   :  { %1419 = vmatpush1.bf16.msra.mxu1 %v3798_v0  ;;  %1612 = vmatpush1.bf16.msra.mxu0 %v3801_v1 }
  0x9e   :  { %1420 = vmatprep.subr.bf16.mxu1 %v3812_v4  ;;  %1613 = vmatprep.subr.bf16.mxu0 %v3815_v5 }
  0xa0   :  { %1302 = vmatmul.mubr.bf16.gmra.mrb[28].mxu0 %v3808_v6  ;;  %1382 = vmatmul.mubr.bf16.gmra.mrb[28].mxu1 %v4035_v7 }
  0xa1   :  { %1421 = vmatpush1.bf16.msra.mxu1 %v3810_v10  ;;  %1614 = vmatpush1.bf16.msra.mxu0 %v3813_v11 }
  0xa2   :  { %1422 = vmatprep.subr.bf16.mxu1 %v3818_v12  ;;  %1615 = vmatprep.subr.bf16.mxu0 %v3821_v14 }
  0xa3   :  { %1424 = vmatprep.mubr.bf16.mxu1 %v3948_v13  ;;  %1617 = vmatprep.mubr.bf16.mxu0 %v3948_v13  ;;  %v2359_v13 = vlaneseq }
  0xa5   :  { %1423 = vmatpush1.bf16.msra.mxu1 %v3816_v18  ;;  %1616 = vmatpush1.bf16.msra.mxu0 %v3819_v19 }
  0xa8   :  { %1425 = vmatmul.mubr.bf16.vlgmr.msra.gmra.mrb[32].mxu1 %v3954_v35  ;;  %1618 = vmatmul.mubr.bf16.vlgmr.msra.gmra.mrb[32].mxu0 %v3954_v35  ;;  %v2360_v35 = vshrl.u32 %v2359_v13, 7 }
  0xa9   :  { %1434 = vmatprep.mubr.bf16.mxu1 %v3958_v42  ;;  %1627 = vmatprep.mubr.bf16.mxu0 %v3958_v42  ;;  %v2357_v42 = vld [vmem:[%s4322_s2] sm:$0x3f]  ;;  %s3900_s2 = smov [#allocation8]  }
  0xaa   :  { %s3258_s13 = sshll.u32 %s3900_s2, 4  ;;  %s3259_s13 = int_to_ptr.vmem [resolvable:$true] %s3258_s13 }
  0xab   :  { %s3866_s14 = scalar_lea.vmem %s3259_s13, 12288  ;;  %p3871_p3 = scmp.lt.s32.totalorder %s3259_s13, %s3259_s13 }
  0xac   :  { %p3867_p2 = scmp.ne.s32.totalorder %s3259_s13, %s3866_s14  ;;  %p3872_p4 = scmp.lt.s32.totalorder %s3866_s14, %s3866_s14 }
  0xae   :  { %p3873_p5 = por %p3872_p4, %p3871_p3 }
  0xb0   :  { %1435 = vmatmul.mubr.bf16.gmra.mrb[36].mxu1 %v3964_v47  ;;  %1628 = vmatmul.mubr.bf16.gmra.mrb[36].mxu0 %v3964_v47  ;;  %v2381_v47 = vsub.s32 5, %v2360_v35  ;;  %p3874_p6 = pnand %p3873_p5, %p3867_p2 }
  0xb1   :  { %1444 = vmatprep.mubr.bf16.mxu1 %v3970_v54  ;;  %1637 = vmatprep.mubr.bf16.mxu0 %v3970_v54 }
  0xb8   :  { %1445 = vmatmul.mubr.bf16.gmra.mrb[40].mxu1 %v3976_v59  ;;  %1638 = vmatmul.mubr.bf16.gmra.mrb[40].mxu0 %v3976_v59  ;;  %v4089_v59 = vrot.slane %v2357_v42, %v2381_v47 }
  0xb9   :  { %1454 = vmatprep.mubr.bf16.mxu1 %v3982_v2  ;;  %1647 = vmatprep.mubr.bf16.mxu0 %v3982_v2  ;;  %v2365_v2 = vsub.s32 1, %v2360_v35 }
  0xc0   :  { %1455 = vmatmul.mubr.bf16.gmra.mrb[44].mxu1 %v3990_v8  ;;  %1648 = vmatmul.mubr.bf16.gmra.mrb[44].mxu0 %v3990_v8  ;;  %v4111_v8 = vrot.slane %v2357_v42, %v2365_v2 }
  0xc1   :  { %1464 = vmatprep.mubr.bf16.mxu1 %v3994_v16  ;;  %1657 = vmatprep.mubr.bf16.mxu0 %v3994_v16 }
  0xc8   :  { %1465 = vmatmul.mubr.bf16.gmra.mrb[48].mxu1 %v4002_v22  ;;  %1658 = vmatmul.mubr.bf16.gmra.mrb[48].mxu0 %v4002_v22 }
  0xc9   :  { %1474 = vmatprep.mubr.bf16.mxu1 %v4006_v28  ;;  %1667 = vmatprep.mubr.bf16.mxu0 %v4006_v28 }
  0xd0   :  { %1475 = vmatmul.mubr.bf16.gmra.mrb[52].mxu1 %v4014_v34  ;;  %1668 = vmatmul.mubr.bf16.gmra.mrb[52].mxu0 %v4014_v34 }
  0xd1   :  { %1484 = vmatprep.mubr.bf16.mxu1 %v4018_v44  ;;  %1677 = vmatprep.mubr.bf16.mxu0 %v4018_v44 }
  0xd8   :  { %1485 = vmatmul.mubr.bf16.gmra.mrb[56].mxu1 %v4026_v52  ;;  %1678 = vmatmul.mubr.bf16.gmra.mrb[56].mxu0 %v4026_v52 }
  0xd9   :  { %1494 = vmatprep.mubr.bf16.mxu1 %v3804_v62  ;;  %1687 = vmatprep.mubr.bf16.mxu0 %v3804_v62 }
  0xe0   :  { %1495 = vmatmul.mubr.bf16.gmra.mrb[60].mxu1 %v3808_v6  ;;  %1688 = vmatmul.mubr.bf16.gmra.mrb[60].mxu0 %v3808_v6 }
  0xe1   :  { %1504 = vmatprep.mubr.bf16.mxu1 %v3950_v15  ;;  %1697 = vmatprep.mubr.bf16.mxu0 %v3950_v15  ;;  %v2369_v15 = vsub.s32 2, %v2360_v35 }
  0xe8   :  { %1505 = vmatmul.mubr.bf16.gmra.mrb[64].mxu1 %v3956_v37  ;;  %1698 = vmatmul.mubr.bf16.gmra.mrb[64].mxu0 %v3956_v37  ;;  %v2377_v37 = vsub.s32 4, %v2360_v35 }
  0xe9   :  { %1514 = vmatprep.mubr.bf16.mxu1 %v3960_v43  ;;  %1707 = vmatprep.mubr.bf16.mxu0 %v3960_v43  ;;  %v2373_v43 = vsub.s32 3, %v2360_v35 }
  0xea   :  { %v4085_v54 = vrot.slane %v2357_v42, %v2377_v37 }
  0xf0   :  { %1515 = vmatmul.mubr.bf16.gmra.mrb[68].mxu1 %v3968_v49  ;;  %1708 = vmatmul.mubr.bf16.gmra.mrb[68].mxu0 %v3968_v49  ;;  %v4083_v49 = vrot.slane %v2357_v42, %v2369_v15 }
  0xf1   :  { %1524 = vmatprep.mubr.bf16.mxu1 %v3972_v55  ;;  %1717 = vmatprep.mubr.bf16.mxu0 %v3972_v55  ;;  %v4087_v55 = vrot.slane %v2357_v42, %v2373_v43 }
  0xf8   :  { %1525 = vmatmul.mubr.bf16.gmra.mrb[72].mxu1 %v3980_v61  ;;  %1718 = vmatmul.mubr.bf16.gmra.mrb[72].mxu0 %v3980_v61  ;;  %v2361_v61 = vsub.s32 0, %v2360_v35 }
  0xf9   :  { %1534 = vmatprep.mubr.bf16.mxu1 %v3984_v3  ;;  %1727 = vmatprep.mubr.bf16.mxu0 %v3984_v3 }
  0xfa   :  { %v4109_v3 = vrot.slane %v2357_v42, %v2361_v61 }
 0x100   :  { %1535 = vmatmul.mubr.bf16.gmra.mrb[76].mxu1 %v3992_v9  ;;  %1728 = vmatmul.mubr.bf16.gmra.mrb[76].mxu0 %v3992_v9 }
 0x101   :  { %1544 = vmatprep.mubr.bf16.mxu1 %v3996_v17  ;;  %1737 = vmatprep.mubr.bf16.mxu0 %v3996_v17 }
 0x108   :  { %1545 = vmatmul.mubr.bf16.gmra.mrb[80].mxu1 %v4004_v23  ;;  %1738 = vmatmul.mubr.bf16.gmra.mrb[80].mxu0 %v4004_v23 }
 0x109   :  { %1554 = vmatprep.mubr.bf16.mxu1 %v4008_v29  ;;  %1747 = vmatprep.mubr.bf16.mxu0 %v4008_v29 }
 0x110   :  { %1555 = vmatmul.mubr.bf16.gmra.mrb[84].mxu1 %v4016_v36  ;;  %1748 = vmatmul.mubr.bf16.gmra.mrb[84].mxu0 %v4016_v36 }
 0x111   :  { %1564 = vmatprep.mubr.bf16.mxu1 %v4020_v45  ;;  %1757 = vmatprep.mubr.bf16.mxu0 %v4020_v45 }
 0x118   :  { %1565 = vmatmul.mubr.bf16.gmra.mrb[88].mxu1 %v4028_v53  ;;  %1758 = vmatmul.mubr.bf16.gmra.mrb[88].mxu0 %v4028_v53 }
 0x119   :  { %1574 = vmatprep.mubr.bf16.mxu1 %v4030_v63  ;;  %1767 = vmatprep.mubr.bf16.mxu0 %v4030_v63 }
 0x120   :  { %1575 = vmatmul.mubr.bf16.gmra.mrb[92].mxu1 %v4035_v7  ;;  %1768 = vmatmul.mubr.bf16.gmra.mrb[92].mxu0 %v4035_v7 }
 0x13b   :  { %v1233_v9 = vpop.f32.mrb[0].mxu0  ;;  %v1313_v16 = vpop.f32.mrb[0].mxu1 }
 0x13c   :  { %v2389_v17 = vadd.f32 %v4109_v3, %v1233_v9  ;;  %v2485_v20 = vadd.f32 %v4109_v3, %v1313_v16  ;;  %v1235_v21 = vpop.f32.mrb[1].mxu0  ;;  %v1315_v22 = vpop.f32.mrb[1].mxu1 }
 0x13d   :  { %v2390_v23 = vadd.f32 %v4111_v8, %v1235_v21  ;;  %v2486_v24 = vadd.f32 %v4111_v8, %v1315_v22  ;;  %v1237_v25 = vpop.f32.mrb[2].mxu0  ;;  %v1317_v26 = vpop.f32.mrb[2].mxu1 }
 0x13e   :  { %v2395_v27 = vadd.f32 %v4109_v3, %v1237_v25  ;;  %v2491_v28 = vadd.f32 %v4109_v3, %v1317_v26  ;;  %v1239_v29 = vpop.f32.mrb[3].mxu0  ;;  %v1319_v30 = vpop.f32.mrb[3].mxu1 }
 0x13f   :  { %v3495_v31 = vpack.c.bf16 %v2390_v23, %v2389_v17  ;;  %v3543_v32 = vpack.c.bf16 %v2486_v24, %v2485_v20  ;;  %v2396_v33 = vadd.f32 %v4111_v8, %v1239_v29  ;;  %v2492_v34 = vadd.f32 %v4111_v8, %v1319_v30 }
 0x141   :  { %3157 = vst [vmem:[#allocation8] sm:$0xff] %v3495_v31  ;;  %3205 = vst [vmem:[#allocation8 + $0x180] sm:$0xff] %v3543_v32  ;;  %v3498_v36 = vpack.c.bf16 %v2396_v33, %v2395_v27  ;;  %v3546_v38 = vpack.c.bf16 %v2492_v34, %v2491_v28 }
 0x143   :  { %3160 = vst [vmem:[#allocation8 + $0x18] sm:$0xff] %v3498_v36  ;;  %3208 = vst [vmem:[#allocation8 + $0x198] sm:$0xff] %v3546_v38  ;;  %v1243_v39 = vpop.f32.mrb[4].mxu0  ;;  %v1323_v40 = vpop.f32.mrb[4].mxu1 }
 0x144   :  { %v2401_v41 = vadd.f32 %v4109_v3, %v1243_v39  ;;  %v2497_v44 = vadd.f32 %v4109_v3, %v1323_v40  ;;  %v1245_v45 = vpop.f32.mrb[5].mxu0  ;;  %v1325_v46 = vpop.f32.mrb[5].mxu1 }
 0x145   :  { %v2402_v48 = vadd.f32 %v4111_v8, %v1245_v45  ;;  %v2498_v50 = vadd.f32 %v4111_v8, %v1325_v46  ;;  %v1247_v51 = vpop.f32.mrb[6].mxu0  ;;  %v1327_v52 = vpop.f32.mrb[6].mxu1 }
 0x146   :  { %v2407_v53 = vadd.f32 %v4109_v3, %v1247_v51  ;;  %v2503_v56 = vadd.f32 %v4109_v3, %v1327_v52  ;;  %v1249_v57 = vpop.f32.mrb[7].mxu0  ;;  %v1329_v58 = vpop.f32.mrb[7].mxu1 }
 0x147   :  { %v3501_v60 = vpack.c.bf16 %v2402_v48, %v2401_v41  ;;  %v3549_v62 = vpack.c.bf16 %v2498_v50, %v2497_v44  ;;  %v2408_v63 = vadd.f32 %v4111_v8, %v1249_v57  ;;  %v2504_v0 = vadd.f32 %v4111_v8, %v1329_v58 }
 0x149   :  { %3163 = vst [vmem:[#allocation8 + $0x30] sm:$0xff] %v3501_v60  ;;  %3211 = vst [vmem:[#allocation8 + $0x1b0] sm:$0xff] %v3549_v62  ;;  %v3504_v1 = vpack.c.bf16 %v2408_v63, %v2407_v53  ;;  %v3552_v4 = vpack.c.bf16 %v2504_v0, %v2503_v56 }
 0x14b   :  { %3166 = vst [vmem:[#allocation8 + $0x48] sm:$0xff] %v3504_v1  ;;  %3214 = vst [vmem:[#allocation8 + $0x1c8] sm:$0xff] %v3552_v4  ;;  %v1253_v5 = vpop.f32.mrb[8].mxu0  ;;  %v1333_v6 = vpop.f32.mrb[8].mxu1 }
 0x14c   :  { %v2413_v7 = vadd.f32 %v4109_v3, %v1253_v5  ;;  %v2509_v10 = vadd.f32 %v4109_v3, %v1333_v6  ;;  %v1255_v11 = vpop.f32.mrb[9].mxu0  ;;  %v1335_v12 = vpop.f32.mrb[9].mxu1 }
 0x14d   :  { %v2414_v14 = vadd.f32 %v4111_v8, %v1255_v11  ;;  %v2510_v18 = vadd.f32 %v4111_v8, %v1335_v12  ;;  %v1257_v19 = vpop.f32.mrb[10].mxu0  ;;  %v1337_v13 = vpop.f32.mrb[10].mxu1 }
 0x14e   :  { %v2419_v35 = vadd.f32 %v4109_v3, %v1257_v19  ;;  %v2515_v15 = vadd.f32 %v4109_v3, %v1337_v13  ;;  %v1259_v37 = vpop.f32.mrb[11].mxu0  ;;  %v1339_v42 = vpop.f32.mrb[11].mxu1 }
 0x14f   :  { %v3507_v43 = vpack.c.bf16 %v2414_v14, %v2413_v7  ;;  %v3555_v47 = vpack.c.bf16 %v2510_v18, %v2509_v10  ;;  %v2420_v61 = vadd.f32 %v4111_v8, %v1259_v37  ;;  %v2516_v2 = vadd.f32 %v4111_v8, %v1339_v42 }
 0x151   :  { %3169 = vst [vmem:[#allocation8 + $0x60] sm:$0xff] %v3507_v43  ;;  %3217 = vst [vmem:[#allocation8 + $0x1e0] sm:$0xff] %v3555_v47  ;;  %v3510_v9 = vpack.c.bf16 %v2420_v61, %v2419_v35  ;;  %v3558_v16 = vpack.c.bf16 %v2516_v2, %v2515_v15 }
 0x153   :  { %3172 = vst [vmem:[#allocation8 + $0x78] sm:$0xff] %v3510_v9  ;;  %3220 = vst [vmem:[#allocation8 + $0x1f8] sm:$0xff] %v3558_v16  ;;  %v1263_v17 = vpop.f32.mrb[12].mxu0  ;;  %v1343_v20 = vpop.f32.mrb[12].mxu1 }
 0x154   :  { %v2425_v21 = vadd.f32 %v4109_v3, %v1263_v17  ;;  %v2521_v22 = vadd.f32 %v4109_v3, %v1343_v20  ;;  %v1265_v23 = vpop.f32.mrb[13].mxu0  ;;  %v1345_v24 = vpop.f32.mrb[13].mxu1 }
 0x155   :  { %v2426_v25 = vadd.f32 %v4111_v8, %v1265_v23  ;;  %v2522_v26 = vadd.f32 %v4111_v8, %v1345_v24  ;;  %v1267_v27 = vpop.f32.mrb[14].mxu0  ;;  %v1347_v28 = vpop.f32.mrb[14].mxu1 }
 0x156   :  { %v2431_v29 = vadd.f32 %v4109_v3, %v1267_v27  ;;  %v2527_v30 = vadd.f32 %v4109_v3, %v1347_v28  ;;  %v1269_v31 = vpop.f32.mrb[15].mxu0  ;;  %v1349_v32 = vpop.f32.mrb[15].mxu1 }
 0x157   :  { %v3513_v33 = vpack.c.bf16 %v2426_v25, %v2425_v21  ;;  %v3561_v34 = vpack.c.bf16 %v2522_v26, %v2521_v22  ;;  %v2432_v36 = vadd.f32 %v4111_v8, %v1269_v31  ;;  %v2528_v38 = vadd.f32 %v4111_v8, %v1349_v32 }
 0x159   :  { %3175 = vst [vmem:[#allocation8 + $0x90] sm:$0xff] %v3513_v33  ;;  %3223 = vst [vmem:[#allocation8 + $0x210] sm:$0xff] %v3561_v34  ;;  %v3516_v39 = vpack.c.bf16 %v2432_v36, %v2431_v29  ;;  %v3564_v40 = vpack.c.bf16 %v2528_v38, %v2527_v30 }
 0x15b   :  { %3178 = vst [vmem:[#allocation8 + $0xa8] sm:$0xff] %v3516_v39  ;;  %3226 = vst [vmem:[#allocation8 + $0x228] sm:$0xff] %v3564_v40  ;;  %v1273_v41 = vpop.f32.mrb[16].mxu0  ;;  %v1353_v44 = vpop.f32.mrb[16].mxu1 }
 0x15c   :  { %v2437_v45 = vadd.f32 %v4109_v3, %v1273_v41  ;;  %v2533_v46 = vadd.f32 %v4109_v3, %v1353_v44  ;;  %v1275_v48 = vpop.f32.mrb[17].mxu0  ;;  %v1355_v50 = vpop.f32.mrb[17].mxu1 }
 0x15d   :  { %v2438_v51 = vadd.f32 %v4111_v8, %v1275_v48  ;;  %v2534_v52 = vadd.f32 %v4111_v8, %v1355_v50  ;;  %v1277_v53 = vpop.f32.mrb[18].mxu0  ;;  %v1357_v56 = vpop.f32.mrb[18].mxu1 }
 0x15e   :  { %v2443_v57 = vadd.f32 %v4109_v3, %v1277_v53  ;;  %v2539_v58 = vadd.f32 %v4109_v3, %v1357_v56  ;;  %v1279_v60 = vpop.f32.mrb[19].mxu0  ;;  %v1359_v62 = vpop.f32.mrb[19].mxu1 }
 0x15f   :  { %v3519_v63 = vpack.c.bf16 %v2438_v51, %v2437_v45  ;;  %v3567_v0 = vpack.c.bf16 %v2534_v52, %v2533_v46  ;;  %v2444_v1 = vadd.f32 %v4111_v8, %v1279_v60  ;;  %v2540_v4 = vadd.f32 %v4111_v8, %v1359_v62 }
 0x161   :  { %3181 = vst [vmem:[#allocation8 + $0xc0] sm:$0xff] %v3519_v63  ;;  %3229 = vst [vmem:[#allocation8 + $0x240] sm:$0xff] %v3567_v0  ;;  %v3522_v5 = vpack.c.bf16 %v2444_v1, %v2443_v57  ;;  %v3570_v6 = vpack.c.bf16 %v2540_v4, %v2539_v58 }
 0x163   :  { %3184 = vst [vmem:[#allocation8 + $0xd8] sm:$0xff] %v3522_v5  ;;  %3232 = vst [vmem:[#allocation8 + $0x258] sm:$0xff] %v3570_v6  ;;  %v1283_v7 = vpop.f32.mrb[20].mxu0  ;;  %v1363_v10 = vpop.f32.mrb[20].mxu1 }
 0x164   :  { %v2449_v11 = vadd.f32 %v4109_v3, %v1283_v7  ;;  %v2545_v12 = vadd.f32 %v4109_v3, %v1363_v10  ;;  %v1285_v14 = vpop.f32.mrb[21].mxu0  ;;  %v1365_v18 = vpop.f32.mrb[21].mxu1 }
 0x165   :  { %v2450_v19 = vadd.f32 %v4111_v8, %v1285_v14  ;;  %v2546_v13 = vadd.f32 %v4111_v8, %v1365_v18  ;;  %v1287_v35 = vpop.f32.mrb[22].mxu0  ;;  %v1367_v15 = vpop.f32.mrb[22].mxu1 }
 0x166   :  { %v2455_v37 = vadd.f32 %v4109_v3, %v1287_v35  ;;  %v2551_v42 = vadd.f32 %v4109_v3, %v1367_v15  ;;  %v1289_v43 = vpop.f32.mrb[23].mxu0  ;;  %v1369_v47 = vpop.f32.mrb[23].mxu1 }
 0x167   :  { %v3525_v61 = vpack.c.bf16 %v2450_v19, %v2449_v11  ;;  %v3573_v2 = vpack.c.bf16 %v2546_v13, %v2545_v12  ;;  %v2456_v9 = vadd.f32 %v4111_v8, %v1289_v43  ;;  %v2552_v16 = vadd.f32 %v4111_v8, %v1369_v47 }
 0x169   :  { %3187 = vst [vmem:[#allocation8 + $0xf0] sm:$0xff] %v3525_v61  ;;  %3235 = vst [vmem:[#allocation8 + $0x270] sm:$0xff] %v3573_v2  ;;  %v3528_v17 = vpack.c.bf16 %v2456_v9, %v2455_v37  ;;  %v3576_v20 = vpack.c.bf16 %v2552_v16, %v2551_v42 }
 0x16b   :  { %3190 = vst [vmem:[#allocation8 + $0x108] sm:$0xff] %v3528_v17  ;;  %3238 = vst [vmem:[#allocation8 + $0x288] sm:$0xff] %v3576_v20  ;;  %v1293_v21 = vpop.f32.mrb[24].mxu0  ;;  %v1373_v22 = vpop.f32.mrb[24].mxu1 }
 0x16c   :  { %v2461_v23 = vadd.f32 %v4109_v3, %v1293_v21  ;;  %v2557_v24 = vadd.f32 %v4109_v3, %v1373_v22  ;;  %v1295_v25 = vpop.f32.mrb[25].mxu0  ;;  %v1375_v26 = vpop.f32.mrb[25].mxu1 }
 0x16d   :  { %v2462_v27 = vadd.f32 %v4111_v8, %v1295_v25  ;;  %v2558_v28 = vadd.f32 %v4111_v8, %v1375_v26  ;;  %v1297_v29 = vpop.f32.mrb[26].mxu0  ;;  %v1377_v30 = vpop.f32.mrb[26].mxu1 }
 0x16e   :  { %v2467_v31 = vadd.f32 %v4109_v3, %v1297_v29  ;;  %v2563_v32 = vadd.f32 %v4109_v3, %v1377_v30  ;;  %v1299_v33 = vpop.f32.mrb[27].mxu0  ;;  %v1379_v34 = vpop.f32.mrb[27].mxu1 }
 0x16f   :  { %v3531_v36 = vpack.c.bf16 %v2462_v27, %v2461_v23  ;;  %v3579_v38 = vpack.c.bf16 %v2558_v28, %v2557_v24  ;;  %v2468_v39 = vadd.f32 %v4111_v8, %v1299_v33  ;;  %v2564_v40 = vadd.f32 %v4111_v8, %v1379_v34 }
 0x171   :  { %3193 = vst [vmem:[#allocation8 + $0x120] sm:$0xff] %v3531_v36  ;;  %3241 = vst [vmem:[#allocation8 + $0x2a0] sm:$0xff] %v3579_v38  ;;  %v3534_v41 = vpack.c.bf16 %v2468_v39, %v2467_v31  ;;  %v3582_v44 = vpack.c.bf16 %v2564_v40, %v2563_v32 }
 0x173   :  { %3196 = vst [vmem:[#allocation8 + $0x138] sm:$0xff] %v3534_v41  ;;  %3244 = vst [vmem:[#allocation8 + $0x2b8] sm:$0xff] %v3582_v44  ;;  %v1303_v45 = vpop.f32.mrb[28].mxu0  ;;  %v1383_v46 = vpop.f32.mrb[28].mxu1 }
 0x174   :  { %v2473_v48 = vadd.f32 %v4109_v3, %v1303_v45  ;;  %v2569_v50 = vadd.f32 %v4109_v3, %v1383_v46  ;;  %v1305_v51 = vpop.f32.mrb[29].mxu0  ;;  %v1385_v52 = vpop.f32.mrb[29].mxu1 }
 0x175   :  { %v2474_v53 = vadd.f32 %v4111_v8, %v1305_v51  ;;  %v2570_v56 = vadd.f32 %v4111_v8, %v1385_v52  ;;  %v1307_v57 = vpop.f32.mrb[30].mxu0  ;;  %v1387_v58 = vpop.f32.mrb[30].mxu1 }
 0x176   :  { %v2479_v60 = vadd.f32 %v4109_v3, %v1307_v57  ;;  %v2575_v62 = vadd.f32 %v4109_v3, %v1387_v58  ;;  %v1309_v63 = vpop.f32.mrb[31].mxu0  ;;  %v1389_v0 = vpop.f32.mrb[31].mxu1 }
 0x177   :  { %v3537_v1 = vpack.c.bf16 %v2474_v53, %v2473_v48  ;;  %v3585_v4 = vpack.c.bf16 %v2570_v56, %v2569_v50  ;;  %v2480_v5 = vadd.f32 %v4111_v8, %v1309_v63  ;;  %v2576_v6 = vadd.f32 %v4111_v8, %v1389_v0 }
 0x179   :  { %3199 = vst [vmem:[#allocation8 + $0x150] sm:$0xff] %v3537_v1  ;;  %3247 = vst [vmem:[#allocation8 + $0x2d0] sm:$0xff] %v3585_v4  ;;  %v3540_v7 = vpack.c.bf16 %v2480_v5, %v2479_v60  ;;  %v3588_v10 = vpack.c.bf16 %v2576_v6, %v2575_v62 }
 0x17b   :  { %3202 = vst [vmem:[#allocation8 + $0x168] sm:$0xff] %v3540_v7  ;;  %3250 = vst [vmem:[#allocation8 + $0x2e8] sm:$0xff] %v3588_v10  ;;  %v1426_v11 = vpop.f32.mrb[32].mxu1  ;;  %v1619_v12 = vpop.f32.mrb[32].mxu0 }
 0x17c   :  { %v2391_v14 = vadd.f32 %v4083_v49, %v1426_v11  ;;  %v2393_v3 = vadd.f32 %v4085_v54, %v1619_v12  ;;  %v1428_v18 = vpop.f32.mrb[33].mxu1  ;;  %v1621_v19 = vpop.f32.mrb[33].mxu0 }
 0x17d   :  { %v2392_v13 = vadd.f32 %v4087_v55, %v1428_v18  ;;  %v2394_v35 = vadd.f32 %v4089_v59, %v1621_v19  ;;  %v1430_v15 = vpop.f32.mrb[34].mxu1  ;;  %v1623_v8 = vpop.f32.mrb[34].mxu0 }
 0x17e   :  { %v2397_v37 = vadd.f32 %v4083_v49, %v1430_v15  ;;  %v2399_v42 = vadd.f32 %v4085_v54, %v1623_v8  ;;  %v1432_v43 = vpop.f32.mrb[35].mxu1  ;;  %v1625_v47 = vpop.f32.mrb[35].mxu0 }
 0x17f   :  { %v3496_v61 = vpack.c.bf16 %v2392_v13, %v2391_v14  ;;  %v3497_v2 = vpack.c.bf16 %v2394_v35, %v2393_v3  ;;  %v2398_v9 = vadd.f32 %v4087_v55, %v1432_v43  ;;  %v2400_v16 = vadd.f32 %v4089_v59, %v1625_v47 }
 0x181   :  { %3158 = vst [vmem:[#allocation8 + $0x8] sm:$0xff] %v3496_v61  ;;  %3159 = vst [vmem:[#allocation8 + $0x10] sm:$0xff] %v3497_v2  ;;  %v3499_v17 = vpack.c.bf16 %v2398_v9, %v2397_v37  ;;  %v3500_v20 = vpack.c.bf16 %v2400_v16, %v2399_v42 }
 0x183   :  { %3161 = vst [vmem:[#allocation8 + $0x20] sm:$0xff] %v3499_v17  ;;  %3162 = vst [vmem:[#allocation8 + $0x28] sm:$0xff] %v3500_v20  ;;  %v1436_v21 = vpop.f32.mrb[36].mxu1  ;;  %v1629_v22 = vpop.f32.mrb[36].mxu0 }
 0x184   :  { %v2403_v23 = vadd.f32 %v4083_v49, %v1436_v21  ;;  %v2405_v24 = vadd.f32 %v4085_v54, %v1629_v22  ;;  %v1438_v25 = vpop.f32.mrb[37].mxu1  ;;  %v1631_v26 = vpop.f32.mrb[37].mxu0 }
 0x185   :  { %v2404_v27 = vadd.f32 %v4087_v55, %v1438_v25  ;;  %v2406_v28 = vadd.f32 %v4089_v59, %v1631_v26  ;;  %v1440_v29 = vpop.f32.mrb[38].mxu1  ;;  %v1633_v30 = vpop.f32.mrb[38].mxu0 }
 0x186   :  { %v2409_v31 = vadd.f32 %v4083_v49, %v1440_v29  ;;  %v2411_v32 = vadd.f32 %v4085_v54, %v1633_v30  ;;  %v1442_v33 = vpop.f32.mrb[39].mxu1  ;;  %v1635_v34 = vpop.f32.mrb[39].mxu0 }
 0x187   :  { %v3502_v36 = vpack.c.bf16 %v2404_v27, %v2403_v23  ;;  %v3503_v38 = vpack.c.bf16 %v2406_v28, %v2405_v24  ;;  %v2410_v39 = vadd.f32 %v4087_v55, %v1442_v33  ;;  %v2412_v40 = vadd.f32 %v4089_v59, %v1635_v34 }
 0x189   :  { %3164 = vst [vmem:[#allocation8 + $0x38] sm:$0xff] %v3502_v36  ;;  %3165 = vst [vmem:[#allocation8 + $0x40] sm:$0xff] %v3503_v38  ;;  %v3505_v41 = vpack.c.bf16 %v2410_v39, %v2409_v31  ;;  %v3506_v44 = vpack.c.bf16 %v2412_v40, %v2411_v32 }
 0x18b   :  { %3167 = vst [vmem:[#allocation8 + $0x50] sm:$0xff] %v3505_v41  ;;  %3168 = vst [vmem:[#allocation8 + $0x58] sm:$0xff] %v3506_v44  ;;  %v1446_v45 = vpop.f32.mrb[40].mxu1  ;;  %v1639_v46 = vpop.f32.mrb[40].mxu0 }
 0x18c   :  { %v2415_v48 = vadd.f32 %v4083_v49, %v1446_v45  ;;  %v2417_v50 = vadd.f32 %v4085_v54, %v1639_v46  ;;  %v1448_v51 = vpop.f32.mrb[41].mxu1  ;;  %v1641_v52 = vpop.f32.mrb[41].mxu0 }
 0x18d   :  { %v2416_v53 = vadd.f32 %v4087_v55, %v1448_v51  ;;  %v2418_v56 = vadd.f32 %v4089_v59, %v1641_v52  ;;  %v1450_v57 = vpop.f32.mrb[42].mxu1  ;;  %v1643_v58 = vpop.f32.mrb[42].mxu0 }
 0x18e   :  { %v2421_v60 = vadd.f32 %v4083_v49, %v1450_v57  ;;  %v2423_v62 = vadd.f32 %v4085_v54, %v1643_v58  ;;  %v1452_v63 = vpop.f32.mrb[43].mxu1  ;;  %v1645_v0 = vpop.f32.mrb[43].mxu0 }
 0x18f   :  { %v3508_v1 = vpack.c.bf16 %v2416_v53, %v2415_v48  ;;  %v3509_v4 = vpack.c.bf16 %v2418_v56, %v2417_v50  ;;  %v2422_v5 = vadd.f32 %v4087_v55, %v1452_v63  ;;  %v2424_v6 = vadd.f32 %v4089_v59, %v1645_v0 }
 0x191   :  { %3170 = vst [vmem:[#allocation8 + $0x68] sm:$0xff] %v3508_v1  ;;  %3171 = vst [vmem:[#allocation8 + $0x70] sm:$0xff] %v3509_v4  ;;  %v3511_v7 = vpack.c.bf16 %v2422_v5, %v2421_v60  ;;  %v3512_v10 = vpack.c.bf16 %v2424_v6, %v2423_v62 }
 0x193   :  { %3173 = vst [vmem:[#allocation8 + $0x80] sm:$0xff] %v3511_v7  ;;  %3174 = vst [vmem:[#allocation8 + $0x88] sm:$0xff] %v3512_v10  ;;  %v1456_v11 = vpop.f32.mrb[44].mxu1  ;;  %v1649_v12 = vpop.f32.mrb[44].mxu0 }
 0x194   :  { %v2427_v14 = vadd.f32 %v4083_v49, %v1456_v11  ;;  %v2429_v3 = vadd.f32 %v4085_v54, %v1649_v12  ;;  %v1458_v18 = vpop.f32.mrb[45].mxu1  ;;  %v1651_v19 = vpop.f32.mrb[45].mxu0 }
 0x195   :  { %v2428_v13 = vadd.f32 %v4087_v55, %v1458_v18  ;;  %v2430_v35 = vadd.f32 %v4089_v59, %v1651_v19  ;;  %v1460_v15 = vpop.f32.mrb[46].mxu1  ;;  %v1653_v8 = vpop.f32.mrb[46].mxu0 }
 0x196   :  { %v2433_v37 = vadd.f32 %v4083_v49, %v1460_v15  ;;  %v2435_v42 = vadd.f32 %v4085_v54, %v1653_v8  ;;  %v1462_v43 = vpop.f32.mrb[47].mxu1  ;;  %v1655_v47 = vpop.f32.mrb[47].mxu0 }
 0x197   :  { %v3514_v61 = vpack.c.bf16 %v2428_v13, %v2427_v14  ;;  %v3515_v2 = vpack.c.bf16 %v2430_v35, %v2429_v3  ;;  %v2434_v9 = vadd.f32 %v4087_v55, %v1462_v43  ;;  %v2436_v16 = vadd.f32 %v4089_v59, %v1655_v47 }
 0x199   :  { %3176 = vst [vmem:[#allocation8 + $0x98] sm:$0xff] %v3514_v61  ;;  %3177 = vst [vmem:[#allocation8 + $0xa0] sm:$0xff] %v3515_v2  ;;  %v3517_v17 = vpack.c.bf16 %v2434_v9, %v2433_v37  ;;  %v3518_v20 = vpack.c.bf16 %v2436_v16, %v2435_v42 }
 0x19b   :  { %3179 = vst [vmem:[#allocation8 + $0xb0] sm:$0xff] %v3517_v17  ;;  %3180 = vst [vmem:[#allocation8 + $0xb8] sm:$0xff] %v3518_v20  ;;  %v1466_v21 = vpop.f32.mrb[48].mxu1  ;;  %v1659_v22 = vpop.f32.mrb[48].mxu0 }
 0x19c   :  { %v2439_v23 = vadd.f32 %v4083_v49, %v1466_v21  ;;  %v2441_v24 = vadd.f32 %v4085_v54, %v1659_v22  ;;  %v1468_v25 = vpop.f32.mrb[49].mxu1  ;;  %v1661_v26 = vpop.f32.mrb[49].mxu0 }
 0x19d   :  { %v2440_v27 = vadd.f32 %v4087_v55, %v1468_v25  ;;  %v2442_v28 = vadd.f32 %v4089_v59, %v1661_v26  ;;  %v1470_v29 = vpop.f32.mrb[50].mxu1  ;;  %v1663_v30 = vpop.f32.mrb[50].mxu0 }
 0x19e   :  { %v2445_v31 = vadd.f32 %v4083_v49, %v1470_v29  ;;  %v2447_v32 = vadd.f32 %v4085_v54, %v1663_v30  ;;  %v1472_v33 = vpop.f32.mrb[51].mxu1  ;;  %v1665_v34 = vpop.f32.mrb[51].mxu0 }
 0x19f   :  { %v3520_v36 = vpack.c.bf16 %v2440_v27, %v2439_v23  ;;  %v3521_v38 = vpack.c.bf16 %v2442_v28, %v2441_v24  ;;  %v2446_v39 = vadd.f32 %v4087_v55, %v1472_v33  ;;  %v2448_v40 = vadd.f32 %v4089_v59, %v1665_v34 }
 0x1a1   :  { %3182 = vst [vmem:[#allocation8 + $0xc8] sm:$0xff] %v3520_v36  ;;  %3183 = vst [vmem:[#allocation8 + $0xd0] sm:$0xff] %v3521_v38  ;;  %v3523_v41 = vpack.c.bf16 %v2446_v39, %v2445_v31  ;;  %v3524_v44 = vpack.c.bf16 %v2448_v40, %v2447_v32 }
 0x1a3   :  { %3185 = vst [vmem:[#allocation8 + $0xe0] sm:$0xff] %v3523_v41  ;;  %3186 = vst [vmem:[#allocation8 + $0xe8] sm:$0xff] %v3524_v44  ;;  %v1476_v45 = vpop.f32.mrb[52].mxu1  ;;  %v1669_v46 = vpop.f32.mrb[52].mxu0 }
 0x1a4   :  { %v2451_v48 = vadd.f32 %v4083_v49, %v1476_v45  ;;  %v2453_v50 = vadd.f32 %v4085_v54, %v1669_v46  ;;  %v1478_v51 = vpop.f32.mrb[53].mxu1  ;;  %v1671_v52 = vpop.f32.mrb[53].mxu0 }
 0x1a5   :  { %v2452_v53 = vadd.f32 %v4087_v55, %v1478_v51  ;;  %v2454_v56 = vadd.f32 %v4089_v59, %v1671_v52  ;;  %v1480_v57 = vpop.f32.mrb[54].mxu1  ;;  %v1673_v58 = vpop.f32.mrb[54].mxu0 }
 0x1a6   :  { %v2457_v60 = vadd.f32 %v4083_v49, %v1480_v57  ;;  %v2459_v62 = vadd.f32 %v4085_v54, %v1673_v58  ;;  %v1482_v63 = vpop.f32.mrb[55].mxu1  ;;  %v1675_v0 = vpop.f32.mrb[55].mxu0 }
 0x1a7   :  { %v3526_v1 = vpack.c.bf16 %v2452_v53, %v2451_v48  ;;  %v3527_v4 = vpack.c.bf16 %v2454_v56, %v2453_v50  ;;  %v2458_v5 = vadd.f32 %v4087_v55, %v1482_v63  ;;  %v2460_v6 = vadd.f32 %v4089_v59, %v1675_v0 }
 0x1a9   :  { %3188 = vst [vmem:[#allocation8 + $0xf8] sm:$0xff] %v3526_v1  ;;  %3189 = vst [vmem:[#allocation8 + $0x100] sm:$0xff] %v3527_v4  ;;  %v3529_v7 = vpack.c.bf16 %v2458_v5, %v2457_v60  ;;  %v3530_v10 = vpack.c.bf16 %v2460_v6, %v2459_v62 }
 0x1ab   :  { %3191 = vst [vmem:[#allocation8 + $0x110] sm:$0xff] %v3529_v7  ;;  %3192 = vst [vmem:[#allocation8 + $0x118] sm:$0xff] %v3530_v10  ;;  %v1486_v11 = vpop.f32.mrb[56].mxu1  ;;  %v1679_v12 = vpop.f32.mrb[56].mxu0 }
 0x1ac   :  { %v2463_v14 = vadd.f32 %v4083_v49, %v1486_v11  ;;  %v2465_v3 = vadd.f32 %v4085_v54, %v1679_v12  ;;  %v1488_v18 = vpop.f32.mrb[57].mxu1  ;;  %v1681_v19 = vpop.f32.mrb[57].mxu0 }
 0x1ad   :  { %v2464_v13 = vadd.f32 %v4087_v55, %v1488_v18  ;;  %v2466_v35 = vadd.f32 %v4089_v59, %v1681_v19  ;;  %v1490_v15 = vpop.f32.mrb[58].mxu1  ;;  %v1683_v8 = vpop.f32.mrb[58].mxu0 }
 0x1ae   :  { %v2469_v37 = vadd.f32 %v4083_v49, %v1490_v15  ;;  %v2471_v42 = vadd.f32 %v4085_v54, %v1683_v8  ;;  %v1492_v43 = vpop.f32.mrb[59].mxu1  ;;  %v1685_v47 = vpop.f32.mrb[59].mxu0 }
 0x1af   :  { %v3532_v61 = vpack.c.bf16 %v2464_v13, %v2463_v14  ;;  %v3533_v2 = vpack.c.bf16 %v2466_v35, %v2465_v3  ;;  %v2470_v9 = vadd.f32 %v4087_v55, %v1492_v43  ;;  %v2472_v16 = vadd.f32 %v4089_v59, %v1685_v47 }
 0x1b1   :  { %3194 = vst [vmem:[#allocation8 + $0x128] sm:$0xff] %v3532_v61  ;;  %3195 = vst [vmem:[#allocation8 + $0x130] sm:$0xff] %v3533_v2  ;;  %v3535_v17 = vpack.c.bf16 %v2470_v9, %v2469_v37  ;;  %v3536_v20 = vpack.c.bf16 %v2472_v16, %v2471_v42 }
 0x1b3   :  { %3197 = vst [vmem:[#allocation8 + $0x140] sm:$0xff] %v3535_v17  ;;  %3198 = vst [vmem:[#allocation8 + $0x148] sm:$0xff] %v3536_v20  ;;  %v1496_v21 = vpop.f32.mrb[60].mxu1  ;;  %v1689_v22 = vpop.f32.mrb[60].mxu0 }
 0x1b4   :  { %v2475_v23 = vadd.f32 %v4083_v49, %v1496_v21  ;;  %v2477_v24 = vadd.f32 %v4085_v54, %v1689_v22  ;;  %v1498_v25 = vpop.f32.mrb[61].mxu1  ;;  %v1691_v26 = vpop.f32.mrb[61].mxu0 }
 0x1b5   :  { %v2476_v27 = vadd.f32 %v4087_v55, %v1498_v25  ;;  %v2478_v28 = vadd.f32 %v4089_v59, %v1691_v26  ;;  %v1500_v29 = vpop.f32.mrb[62].mxu1  ;;  %v1693_v30 = vpop.f32.mrb[62].mxu0 }
 0x1b6   :  { %v2481_v31 = vadd.f32 %v4083_v49, %v1500_v29  ;;  %v2483_v32 = vadd.f32 %v4085_v54, %v1693_v30  ;;  %v1502_v33 = vpop.f32.mrb[63].mxu1  ;;  %v1695_v34 = vpop.f32.mrb[63].mxu0 }
 0x1b7   :  { %v3538_v36 = vpack.c.bf16 %v2476_v27, %v2475_v23  ;;  %v3539_v38 = vpack.c.bf16 %v2478_v28, %v2477_v24  ;;  %v2482_v39 = vadd.f32 %v4087_v55, %v1502_v33  ;;  %v2484_v40 = vadd.f32 %v4089_v59, %v1695_v34 }
 0x1b9   :  { %3200 = vst [vmem:[#allocation8 + $0x158] sm:$0xff] %v3538_v36  ;;  %3201 = vst [vmem:[#allocation8 + $0x160] sm:$0xff] %v3539_v38  ;;  %v3541_v41 = vpack.c.bf16 %v2482_v39, %v2481_v31  ;;  %v3542_v44 = vpack.c.bf16 %v2484_v40, %v2483_v32 }
 0x1bb   :  { %3203 = vst [vmem:[#allocation8 + $0x170] sm:$0xff] %v3541_v41  ;;  %3204 = vst [vmem:[#allocation8 + $0x178] sm:$0xff] %v3542_v44  ;;  %v1506_v45 = vpop.f32.mrb[64].mxu1  ;;  %v1699_v46 = vpop.f32.mrb[64].mxu0 }
 0x1bc   :  { %v2487_v48 = vadd.f32 %v4083_v49, %v1506_v45  ;;  %v2489_v50 = vadd.f32 %v4085_v54, %v1699_v46  ;;  %v1508_v51 = vpop.f32.mrb[65].mxu1  ;;  %v1701_v52 = vpop.f32.mrb[65].mxu0 }
 0x1bd   :  { %v2488_v53 = vadd.f32 %v4087_v55, %v1508_v51  ;;  %v2490_v56 = vadd.f32 %v4089_v59, %v1701_v52  ;;  %v1510_v57 = vpop.f32.mrb[66].mxu1  ;;  %v1703_v58 = vpop.f32.mrb[66].mxu0 }
 0x1be   :  { %v2493_v60 = vadd.f32 %v4083_v49, %v1510_v57  ;;  %v2495_v62 = vadd.f32 %v4085_v54, %v1703_v58  ;;  %v1512_v63 = vpop.f32.mrb[67].mxu1  ;;  %v1705_v0 = vpop.f32.mrb[67].mxu0 }
 0x1bf   :  { %v3544_v1 = vpack.c.bf16 %v2488_v53, %v2487_v48  ;;  %v3545_v4 = vpack.c.bf16 %v2490_v56, %v2489_v50  ;;  %v2494_v5 = vadd.f32 %v4087_v55, %v1512_v63  ;;  %v2496_v6 = vadd.f32 %v4089_v59, %v1705_v0 }
 0x1c1   :  { %3206 = vst [vmem:[#allocation8 + $0x188] sm:$0xff] %v3544_v1  ;;  %3207 = vst [vmem:[#allocation8 + $0x190] sm:$0xff] %v3545_v4  ;;  %v3547_v7 = vpack.c.bf16 %v2494_v5, %v2493_v60  ;;  %v3548_v10 = vpack.c.bf16 %v2496_v6, %v2495_v62 }
 0x1c3   :  { %3209 = vst [vmem:[#allocation8 + $0x1a0] sm:$0xff] %v3547_v7  ;;  %3210 = vst [vmem:[#allocation8 + $0x1a8] sm:$0xff] %v3548_v10  ;;  %v1516_v11 = vpop.f32.mrb[68].mxu1  ;;  %v1709_v12 = vpop.f32.mrb[68].mxu0 }
 0x1c4   :  { %v2499_v14 = vadd.f32 %v4083_v49, %v1516_v11  ;;  %v2501_v3 = vadd.f32 %v4085_v54, %v1709_v12  ;;  %v1518_v18 = vpop.f32.mrb[69].mxu1  ;;  %v1711_v19 = vpop.f32.mrb[69].mxu0 }
 0x1c5   :  { %v2500_v13 = vadd.f32 %v4087_v55, %v1518_v18  ;;  %v2502_v35 = vadd.f32 %v4089_v59, %v1711_v19  ;;  %v1520_v15 = vpop.f32.mrb[70].mxu1  ;;  %v1713_v8 = vpop.f32.mrb[70].mxu0 }
 0x1c6   :  { %v2505_v37 = vadd.f32 %v4083_v49, %v1520_v15  ;;  %v2507_v42 = vadd.f32 %v4085_v54, %v1713_v8  ;;  %v1522_v43 = vpop.f32.mrb[71].mxu1  ;;  %v1715_v47 = vpop.f32.mrb[71].mxu0 }
 0x1c7   :  { %v3550_v61 = vpack.c.bf16 %v2500_v13, %v2499_v14  ;;  %v3551_v2 = vpack.c.bf16 %v2502_v35, %v2501_v3  ;;  %v2506_v9 = vadd.f32 %v4087_v55, %v1522_v43  ;;  %v2508_v16 = vadd.f32 %v4089_v59, %v1715_v47 }
 0x1c9   :  { %3212 = vst [vmem:[#allocation8 + $0x1b8] sm:$0xff] %v3550_v61  ;;  %3213 = vst [vmem:[#allocation8 + $0x1c0] sm:$0xff] %v3551_v2  ;;  %v3553_v17 = vpack.c.bf16 %v2506_v9, %v2505_v37  ;;  %v3554_v20 = vpack.c.bf16 %v2508_v16, %v2507_v42 }
 0x1cb   :  { %3215 = vst [vmem:[#allocation8 + $0x1d0] sm:$0xff] %v3553_v17  ;;  %3216 = vst [vmem:[#allocation8 + $0x1d8] sm:$0xff] %v3554_v20  ;;  %v1526_v21 = vpop.f32.mrb[72].mxu1  ;;  %v1719_v22 = vpop.f32.mrb[72].mxu0 }
 0x1cc   :  { %v2511_v23 = vadd.f32 %v4083_v49, %v1526_v21  ;;  %v2513_v24 = vadd.f32 %v4085_v54, %v1719_v22  ;;  %v1528_v25 = vpop.f32.mrb[73].mxu1  ;;  %v1721_v26 = vpop.f32.mrb[73].mxu0 }
 0x1cd   :  { %v2512_v27 = vadd.f32 %v4087_v55, %v1528_v25  ;;  %v2514_v28 = vadd.f32 %v4089_v59, %v1721_v26  ;;  %v1530_v29 = vpop.f32.mrb[74].mxu1  ;;  %v1723_v30 = vpop.f32.mrb[74].mxu0 }
 0x1ce   :  { %v2517_v31 = vadd.f32 %v4083_v49, %v1530_v29  ;;  %v2519_v32 = vadd.f32 %v4085_v54, %v1723_v30  ;;  %v1532_v33 = vpop.f32.mrb[75].mxu1  ;;  %v1725_v34 = vpop.f32.mrb[75].mxu0 }
 0x1cf   :  { %v3556_v36 = vpack.c.bf16 %v2512_v27, %v2511_v23  ;;  %v3557_v38 = vpack.c.bf16 %v2514_v28, %v2513_v24  ;;  %v2518_v39 = vadd.f32 %v4087_v55, %v1532_v33  ;;  %v2520_v40 = vadd.f32 %v4089_v59, %v1725_v34 }
 0x1d1   :  { %3218 = vst [vmem:[#allocation8 + $0x1e8] sm:$0xff] %v3556_v36  ;;  %3219 = vst [vmem:[#allocation8 + $0x1f0] sm:$0xff] %v3557_v38  ;;  %v3559_v41 = vpack.c.bf16 %v2518_v39, %v2517_v31  ;;  %v3560_v44 = vpack.c.bf16 %v2520_v40, %v2519_v32 }
 0x1d3   :  { %3221 = vst [vmem:[#allocation8 + $0x200] sm:$0xff] %v3559_v41  ;;  %3222 = vst [vmem:[#allocation8 + $0x208] sm:$0xff] %v3560_v44  ;;  %v1536_v45 = vpop.f32.mrb[76].mxu1  ;;  %v1729_v46 = vpop.f32.mrb[76].mxu0 }
 0x1d4   :  { %v2523_v48 = vadd.f32 %v4083_v49, %v1536_v45  ;;  %v2525_v50 = vadd.f32 %v4085_v54, %v1729_v46  ;;  %v1538_v51 = vpop.f32.mrb[77].mxu1  ;;  %v1731_v52 = vpop.f32.mrb[77].mxu0 }
 0x1d5   :  { %v2524_v53 = vadd.f32 %v4087_v55, %v1538_v51  ;;  %v2526_v56 = vadd.f32 %v4089_v59, %v1731_v52  ;;  %v1540_v57 = vpop.f32.mrb[78].mxu1  ;;  %v1733_v58 = vpop.f32.mrb[78].mxu0 }
 0x1d6   :  { %v2529_v60 = vadd.f32 %v4083_v49, %v1540_v57  ;;  %v2531_v62 = vadd.f32 %v4085_v54, %v1733_v58  ;;  %v1542_v63 = vpop.f32.mrb[79].mxu1  ;;  %v1735_v0 = vpop.f32.mrb[79].mxu0 }
 0x1d7   :  { %v3562_v1 = vpack.c.bf16 %v2524_v53, %v2523_v48  ;;  %v3563_v4 = vpack.c.bf16 %v2526_v56, %v2525_v50  ;;  %v2530_v5 = vadd.f32 %v4087_v55, %v1542_v63  ;;  %v2532_v6 = vadd.f32 %v4089_v59, %v1735_v0 }
 0x1d9   :  { %3224 = vst [vmem:[#allocation8 + $0x218] sm:$0xff] %v3562_v1  ;;  %3225 = vst [vmem:[#allocation8 + $0x220] sm:$0xff] %v3563_v4  ;;  %v3565_v7 = vpack.c.bf16 %v2530_v5, %v2529_v60  ;;  %v3566_v10 = vpack.c.bf16 %v2532_v6, %v2531_v62 }
 0x1db   :  { %3227 = vst [vmem:[#allocation8 + $0x230] sm:$0xff] %v3565_v7  ;;  %3228 = vst [vmem:[#allocation8 + $0x238] sm:$0xff] %v3566_v10  ;;  %v1546_v11 = vpop.f32.mrb[80].mxu1  ;;  %v1739_v12 = vpop.f32.mrb[80].mxu0 }
 0x1dc   :  { %v2535_v14 = vadd.f32 %v4083_v49, %v1546_v11  ;;  %v2537_v3 = vadd.f32 %v4085_v54, %v1739_v12  ;;  %v1548_v18 = vpop.f32.mrb[81].mxu1  ;;  %v1741_v19 = vpop.f32.mrb[81].mxu0 }
 0x1dd   :  { %v2536_v13 = vadd.f32 %v4087_v55, %v1548_v18  ;;  %v2538_v35 = vadd.f32 %v4089_v59, %v1741_v19  ;;  %v1550_v15 = vpop.f32.mrb[82].mxu1  ;;  %v1743_v8 = vpop.f32.mrb[82].mxu0 }
 0x1de   :  { %v2541_v37 = vadd.f32 %v4083_v49, %v1550_v15  ;;  %v2543_v42 = vadd.f32 %v4085_v54, %v1743_v8  ;;  %v1552_v43 = vpop.f32.mrb[83].mxu1  ;;  %v1745_v47 = vpop.f32.mrb[83].mxu0 }
 0x1df   :  { %v3568_v61 = vpack.c.bf16 %v2536_v13, %v2535_v14  ;;  %v3569_v2 = vpack.c.bf16 %v2538_v35, %v2537_v3  ;;  %v2542_v9 = vadd.f32 %v4087_v55, %v1552_v43  ;;  %v2544_v16 = vadd.f32 %v4089_v59, %v1745_v47 }
 0x1e1   :  { %3230 = vst [vmem:[#allocation8 + $0x248] sm:$0xff] %v3568_v61  ;;  %3231 = vst [vmem:[#allocation8 + $0x250] sm:$0xff] %v3569_v2  ;;  %v3571_v17 = vpack.c.bf16 %v2542_v9, %v2541_v37  ;;  %v3572_v20 = vpack.c.bf16 %v2544_v16, %v2543_v42 }
 0x1e3   :  { %3233 = vst [vmem:[#allocation8 + $0x260] sm:$0xff] %v3571_v17  ;;  %3234 = vst [vmem:[#allocation8 + $0x268] sm:$0xff] %v3572_v20  ;;  %v1556_v21 = vpop.f32.mrb[84].mxu1  ;;  %v1749_v22 = vpop.f32.mrb[84].mxu0 }
 0x1e4   :  { %v2547_v23 = vadd.f32 %v4083_v49, %v1556_v21  ;;  %v2549_v24 = vadd.f32 %v4085_v54, %v1749_v22  ;;  %v1558_v25 = vpop.f32.mrb[85].mxu1  ;;  %v1751_v26 = vpop.f32.mrb[85].mxu0 }
 0x1e5   :  { %v2548_v27 = vadd.f32 %v4087_v55, %v1558_v25  ;;  %v2550_v28 = vadd.f32 %v4089_v59, %v1751_v26  ;;  %v1560_v29 = vpop.f32.mrb[86].mxu1  ;;  %v1753_v30 = vpop.f32.mrb[86].mxu0 }
 0x1e6   :  { %v2553_v31 = vadd.f32 %v4083_v49, %v1560_v29  ;;  %v2555_v32 = vadd.f32 %v4085_v54, %v1753_v30  ;;  %v1562_v33 = vpop.f32.mrb[87].mxu1  ;;  %v1755_v34 = vpop.f32.mrb[87].mxu0 }
 0x1e7   :  { %v3574_v36 = vpack.c.bf16 %v2548_v27, %v2547_v23  ;;  %v3575_v38 = vpack.c.bf16 %v2550_v28, %v2549_v24  ;;  %v2554_v39 = vadd.f32 %v4087_v55, %v1562_v33  ;;  %v2556_v40 = vadd.f32 %v4089_v59, %v1755_v34 }
 0x1e9   :  { %3236 = vst [vmem:[#allocation8 + $0x278] sm:$0xff] %v3574_v36  ;;  %3237 = vst [vmem:[#allocation8 + $0x280] sm:$0xff] %v3575_v38  ;;  %v3577_v41 = vpack.c.bf16 %v2554_v39, %v2553_v31  ;;  %v3578_v44 = vpack.c.bf16 %v2556_v40, %v2555_v32 }
 0x1eb   :  { %3239 = vst [vmem:[#allocation8 + $0x290] sm:$0xff] %v3577_v41  ;;  %3240 = vst [vmem:[#allocation8 + $0x298] sm:$0xff] %v3578_v44  ;;  %v1566_v45 = vpop.f32.mrb[88].mxu1  ;;  %v1759_v46 = vpop.f32.mrb[88].mxu0 }
 0x1ec   :  { %v2559_v48 = vadd.f32 %v4083_v49, %v1566_v45  ;;  %v2561_v50 = vadd.f32 %v4085_v54, %v1759_v46  ;;  %v1568_v51 = vpop.f32.mrb[89].mxu1  ;;  %v1761_v52 = vpop.f32.mrb[89].mxu0 }
 0x1ed   :  { %v2560_v53 = vadd.f32 %v4087_v55, %v1568_v51  ;;  %v2562_v56 = vadd.f32 %v4089_v59, %v1761_v52  ;;  %v1570_v57 = vpop.f32.mrb[90].mxu1  ;;  %v1763_v58 = vpop.f32.mrb[90].mxu0 }
 0x1ee   :  { %v2565_v60 = vadd.f32 %v4083_v49, %v1570_v57  ;;  %v2567_v62 = vadd.f32 %v4085_v54, %v1763_v58  ;;  %v1572_v63 = vpop.f32.mrb[91].mxu1  ;;  %v1765_v0 = vpop.f32.mrb[91].mxu0 }
 0x1ef   :  { %v3580_v1 = vpack.c.bf16 %v2560_v53, %v2559_v48  ;;  %v3581_v4 = vpack.c.bf16 %v2562_v56, %v2561_v50  ;;  %v2566_v5 = vadd.f32 %v4087_v55, %v1572_v63  ;;  %v2568_v6 = vadd.f32 %v4089_v59, %v1765_v0 }
 0x1f1   :  { %3242 = vst [vmem:[#allocation8 + $0x2a8] sm:$0xff] %v3580_v1  ;;  %3243 = vst [vmem:[#allocation8 + $0x2b0] sm:$0xff] %v3581_v4  ;;  %v3583_v7 = vpack.c.bf16 %v2566_v5, %v2565_v60  ;;  %v3584_v10 = vpack.c.bf16 %v2568_v6, %v2567_v62 }
 0x1f3   :  { %3245 = vst [vmem:[#allocation8 + $0x2c0] sm:$0xff] %v3583_v7  ;;  %3246 = vst [vmem:[#allocation8 + $0x2c8] sm:$0xff] %v3584_v10  ;;  %v1576_v11 = vpop.f32.mrb[92].mxu1  ;;  %v1769_v12 = vpop.f32.mrb[92].mxu0 }
 0x1f4   :  { %v2571_v14 = vadd.f32 %v4083_v49, %v1576_v11  ;;  %v2573_v3 = vadd.f32 %v4085_v54, %v1769_v12  ;;  %v1578_v18 = vpop.f32.mrb[93].mxu1  ;;  %v1771_v19 = vpop.f32.mrb[93].mxu0 }
 0x1f5   :  { %v2572_v13 = vadd.f32 %v4087_v55, %v1578_v18  ;;  %v2574_v35 = vadd.f32 %v4089_v59, %v1771_v19  ;;  %v1580_v15 = vpop.f32.mrb[94].mxu1  ;;  %v1773_v8 = vpop.f32.mrb[94].mxu0 }
 0x1f6   :  { %v2577_v37 = vadd.f32 %v4083_v49, %v1580_v15  ;;  %v2579_v42 = vadd.f32 %v4085_v54, %v1773_v8  ;;  %v1582_v43 = vpop.f32.mrb[95].mxu1  ;;  %v1775_v47 = vpop.f32.mrb[95].mxu0 }
 0x1f7   :  { %v3586_v61 = vpack.c.bf16 %v2572_v13, %v2571_v14  ;;  %v3587_v2 = vpack.c.bf16 %v2574_v35, %v2573_v3  ;;  %v2578_v9 = vadd.f32 %v4087_v55, %v1582_v43  ;;  %v2580_v16 = vadd.f32 %v4089_v59, %v1775_v47 }
 0x1f9   :  { %3248 = vst [vmem:[#allocation8 + $0x2d8] sm:$0xff] %v3586_v61  ;;  %3249 = vst [vmem:[#allocation8 + $0x2e0] sm:$0xff] %v3587_v2  ;;  %v3589_v17 = vpack.c.bf16 %v2578_v9, %v2577_v37  ;;  %v3590_v20 = vpack.c.bf16 %v2580_v16, %v2579_v42 }
 0x1fb   :  { %3251 = vst [vmem:[#allocation8 + $0x2f0] sm:$0xff] %v3589_v17  ;;  %3252 = vst [vmem:[#allocation8 + $0x2f8] sm:$0xff] %v3590_v20 }
 0x1fc   :  { %3877 = shalt.err (!%p3874_p6)
}
 0x1fd   :  { %s3878_s17 = scalar_lea.hbm %s4323_s3, 12288 }
 0x1fe   :  { %p3879_p7 = scmp.ne.s32.totalorder %s4323_s3, %s3878_s17  ;;  %p3882_p8 = scmp.lt.u32.totalorder %s3878_s17, %s4323_s3 }
 0x200   :  { %p3884_p9 = pnand %p3882_p8, %p3879_p7 }
 0x202   :  { %3887 = shalt.err (!%p3884_p9)
}
 0x203   :  { %3264 = dma.vmem_to_hbm [thread:$0]  %s3259_s13, 12288, %s4323_s3, [#allocation5], %s3898_s0, %s3898_s0, %s3899_s9  }
 0x204   :  { %3892 = dma.done.wait [#allocation5], 12288  }
 0x205   :  { %3893 = vsyncadd [#allocation5], 4294955008 }
 0x206   :  { %3268 = vsyncpa [#allocation4], 1 }
 0x207   :  { %3269 = vsyncpa [#allocation7], 1 }
 0x208   :  { %3270 = vsyncpa [#allocation5], 1 }

</bundles_post_ra>
